<compile_context>
chip_gen: v7x
topology: tpu7x:2x2x1
jax: 0.10.0
libtpu: 0.0.40
codegen_flags: <defaults>
</compile_context>

<pallas_src>
import math
import jax
import jax.numpy as jnp
from jax import lax
from jax.experimental import pallas as pl
from jax.experimental.pallas import tpu as pltpu

# ---- small BERT config (bert-base-uncased scaled down) ----
VOCAB = 128
TYPE_VOCAB = 2
MAX_POS = 16
HIDDEN = 32
N_HEADS = 4
HEAD_DIM = HIDDEN // N_HEADS
INTER = 64
N_LAYERS = 2
LN_EPS = 1e-12
NEG_INF = -10000.0          # HF-style additive mask value
VEC_LANES = 128             # packed small-parameter rows padded to one lane tile

VMEM_SPEC = pl.BlockSpec(memory_space=pltpu.MemorySpace.VMEM)
N_KERNEL_INPUTS = 9

# row indices inside the packed per-layer parameter block (8 rows x 128 lanes)
_QKV_B, _AO_B, _LN1_G, _LN1_B, _FF1_B, _FF2_B, _LN2_G, _LN2_B = range(8)
# row indices inside the packed global parameter block
_EMB_G, _EMB_B, _POOL_B = range(3)


# ---------------- fused whole-forward Pallas kernel ----------------
def _make_bert_kernel(batch, seq):
    scale = 1.0 / math.sqrt(HEAD_DIM)

    def _mxu(a, b):
        # bf16 MXU inputs, f32 accumulation (weights are stored bf16 already).
        return jnp.dot(a.astype(jnp.bfloat16), b.astype(jnp.bfloat16),
                       preferred_element_type=jnp.float32)

    def _ln(x, g, b):
        mu = jnp.mean(x, axis=-1, keepdims=True)
        xc = x - mu
        var = jnp.mean(xc * xc, axis=-1, keepdims=True)
        return xc * lax.rsqrt(var + LN_EPS) * g + b

    def _gelu(y):
        # TODO(synk): HF BERT uses exact erf-GELU; tanh approximation used here.
        c = math.sqrt(2.0 / math.pi)
        return 0.5 * y * (1.0 + jnp.tanh(c * (y + 0.044715 * y * y * y)))

    def kernel(emb_ref, bias_ref, gvec_ref, lvec_ref,
               qkv_w_ref, ao_w_ref, ff1_w_ref, ff2_w_ref, pool_w_ref,
               out_ref):
        gv = gvec_ref[...]                                   # (8, 128) packed globals
        # embedding layernorm
        x = _ln(emb_ref[...],
                gv[_EMB_G:_EMB_G + 1, :HIDDEN],
                gv[_EMB_B:_EMB_B + 1, :HIDDEN])              # (B*S, H) f32
        # block-diagonal additive attention bias, hoisted out of all loops
        attn_bias = bias_ref[...]                            # (B*S, B*S) f32

        for l in range(N_LAYERS):                            # weights stay VMEM-resident
            lv = lvec_ref[l]                                 # (8, 128) packed layer vectors

            # ---- fused QKV projection: one MXU pass with N = 3*H ----
            qkv = _mxu(x, qkv_w_ref[l]) + lv[_QKV_B:_QKV_B + 1, :3 * HIDDEN]
            qkv_bf = qkv.astype(jnp.bfloat16)                # single cast, reused per head

            # ---- attention: all batches at once per head (block-diag mask) ----
            ctx_parts = []
            for hd in range(N_HEADS):
                c0 = hd * HEAD_DIM
                q_h = qkv_bf[:, 0 * HIDDEN + c0:0 * HIDDEN + c0 + HEAD_DIM]
                k_h = qkv_bf[:, 1 * HIDDEN + c0:1 * HIDDEN + c0 + HEAD_DIM]
                v_h = qkv_bf[:, 2 * HIDDEN + c0:2 * HIDDEN + c0 + HEAD_DIM]
                # q @ k^T without explicit transpose (contract last axes)
                s = lax.dot_general(q_h, k_h, (((1,), (1,)), ((), ())),
                                    preferred_element_type=jnp.float32)
                s = s * scale + attn_bias                    # masks cross-batch + padding
                s = s - jnp.max(s, axis=-1, keepdims=True)
                p = jnp.exp(s)
                p = p * pl.reciprocal(jnp.sum(p, axis=-1, keepdims=True),
                                      approx=True)
                ctx_parts.append(_mxu(p, v_h))               # (B*S, dh) f32
            ctx = jnp.concatenate(ctx_parts, axis=-1)        # (B*S, H)

            # ---- single fused output projection over all heads ----
            attn_out = _mxu(ctx, ao_w_ref[l]) + lv[_AO_B:_AO_B + 1, :HIDDEN]

            # ---- residual + LN fused ----
            x = _ln(attn_out + x,
                    lv[_LN1_G:_LN1_G + 1, :HIDDEN],
                    lv[_LN1_B:_LN1_B + 1, :HIDDEN])

            # ---- FFN + residual + LN fused ----
            ffh = _gelu(_mxu(x, ff1_w_ref[l]) + lv[_FF1_B:_FF1_B + 1, :INTER])
            ffo = _mxu(ffh, ff2_w_ref[l]) + lv[_FF2_B:_FF2_B + 1, :HIDDEN]
            x = _ln(ffo + x,
                    lv[_LN2_G:_LN2_G + 1, :HIDDEN],
                    lv[_LN2_B:_LN2_B + 1, :HIDDEN])

        # ---- pooler over the [CLS] row of every sequence (reshape, no concat) ----
        cls = x.reshape(batch, seq, HIDDEN)[:, 0, :]          # (B, H)
        pooled = jnp.tanh(_mxu(cls, pool_w_ref[...])
                          + gv[_POOL_B:_POOL_B + 1, :HIDDEN])
        out_ref[...] = pooled.astype(out_ref.dtype)

    return kernel


# ---------------- model glue ----------------
def init_params(key):
    def normal(k, shape, dtype=jnp.float32):
        return (jax.random.normal(k, shape, jnp.float32) * 0.02).astype(dtype)

    def pack(rows):
        blk = jnp.zeros((8, VEC_LANES), jnp.float32)
        for i, r in enumerate(rows):
            r = jnp.asarray(r, jnp.float32).reshape(-1)
            blk = blk.at[i, :r.shape[0]].set(r)
        return blk

    keys = iter(jax.random.split(key, 16))
    W = jnp.bfloat16  # matmul weights stored bf16 (MXU-native, less HBM traffic)

    ones_h = jnp.ones((HIDDEN,), jnp.float32)
    zeros_h = jnp.zeros((HIDDEN,), jnp.float32)

    # packed globals: emb_ln_g, emb_ln_b, pool_b
    glob_vec = pack([ones_h, zeros_h, zeros_h])
    # packed per-layer vectors: qkv_b, ao_b, ln1_g, ln1_b, ff1_b, ff2_b, ln2_g, ln2_b
    layer_block = pack([jnp.zeros((3 * HIDDEN,)), zeros_h,
                        ones_h, zeros_h,
                        jnp.zeros((INTER,)), zeros_h,
                        ones_h, zeros_h])
    layer_vec = jnp.tile(layer_block[None], (N_LAYERS, 1, 1))

    params = {
        "word_emb": normal(next(keys), (VOCAB, HIDDEN)),
        "pos_emb": normal(next(keys), (MAX_POS, HIDDEN)),
        "type_emb": normal(next(keys), (TYPE_VOCAB, HIDDEN)),
        "glob_vec": glob_vec,                                   # (8, 128) f32
        "layer_vec": layer_vec,                                 # (L, 8, 128) f32
        # per-layer matmul weights stacked on a leading N_LAYERS axis
        "qkv_w": normal(next(keys), (N_LAYERS, HIDDEN, 3 * HIDDEN), W),  # q|k|v fused
        "ao_w": normal(next(keys), (N_LAYERS, HIDDEN, HIDDEN), W),
        "ff1_w": normal(next(keys), (N_LAYERS, HIDDEN, INTER), W),
        "ff2_w": normal(next(keys), (N_LAYERS, INTER, HIDDEN), W),
        "pool_w": normal(next(keys), (HIDDEN, HIDDEN), W),
    }
    return params


def bert_pooler_forward(params, ids, mask, token_type_ids):
    B, S = ids.shape
    # TODO(synk): embedding-table gather stays in plain JAX glue (no dense hot path).
    emb = (params["word_emb"][ids]
           + params["pos_emb"][:S][None, :, :]
           + params["type_emb"][token_type_ids])                # (B, S, H) f32
    emb2d = emb.reshape(B * S, HIDDEN)

    # block-diagonal additive attention bias over the flattened (B*S) token axis:
    # cross-batch pairs and masked key positions get -10000 (HF-style), so one
    # (B*S, B*S) softmax per head reproduces per-sequence attention exactly.
    batch_ids = jnp.repeat(jnp.arange(B, dtype=jnp.int32), S)
    key_ok = (batch_ids[None, :] == batch_ids[:, None]) & (mask.reshape(B * S)[None, :] > 0)
    attn_bias = jnp.where(key_ok, 0.0, NEG_INF).astype(jnp.float32)  # (B*S, B*S)

    pooled = pl.pallas_call(
        _make_bert_kernel(B, S),
        out_shape=jax.ShapeDtypeStruct((B, HIDDEN), jnp.float32),
        in_specs=[VMEM_SPEC] * N_KERNEL_INPUTS,
        out_specs=VMEM_SPEC,
    )(emb2d, attn_bias,
      params["glob_vec"], params["layer_vec"],
      params["qkv_w"], params["ao_w"], params["ff1_w"], params["ff2_w"],
      params["pool_w"])
    return pooled                                               # pooler_output: (B, HIDDEN)


if __name__ == "__main__":
    key = jax.random.PRNGKey(0)
    pkey, ikey = jax.random.split(key)
    params = init_params(pkey)

    B, S = 2, 8
    ids = jax.random.randint(ikey, (B, S), 0, VOCAB, dtype=jnp.int32)
    mask = jnp.ones((B, S), dtype=jnp.int32).at[1, 6:].set(0)
    token_type_ids = jnp.concatenate(
        [jnp.zeros((B, S // 2), jnp.int32), jnp.ones((B, S // 2), jnp.int32)], axis=1)

    fwd = jax.jit(bert_pooler_forward)
    pooled = fwd(params, ids, mask, token_type_ids)
    jax.block_until_ready(pooled)
    assert pooled.shape == (B, HIDDEN) and pooled.dtype == jnp.float32
    assert bool(jnp.all(jnp.isfinite(pooled)))
    print("KERNEL_OK")
</pallas_src>

<mosaic_0001>
module attributes {stable_mosaic.version = 11 : i64} {
  func.func @kernel(%arg0: memref<16x32xf32, #tpu.memory_space<vmem>>, %arg1: memref<16x16xf32, #tpu.memory_space<vmem>>, %arg2: memref<8x128xf32, #tpu.memory_space<vmem>>, %arg3: memref<2x8x128xf32, #tpu.memory_space<vmem>>, %arg4: memref<2x32x96xbf16, #tpu.memory_space<vmem>>, %arg5: memref<2x32x32xbf16, #tpu.memory_space<vmem>>, %arg6: memref<2x32x64xbf16, #tpu.memory_space<vmem>>, %arg7: memref<2x64x32xbf16, #tpu.memory_space<vmem>>, %arg8: memref<32x32xbf16, #tpu.memory_space<vmem>>, %arg9: memref<2x32xf32, #tpu.memory_space<vmem>>) attributes {dimension_semantics = [], scalar_prefetch = 0 : i64, scratch_operands = 0 : i64, tpu.core_type = #tpu.core_type<tc>} {
    %c0 = arith.constant 0 : index
    %c0_0 = arith.constant 0 : index
    %0 = vector.load %arg2[%c0, %c0_0] : memref<8x128xf32, #tpu.memory_space<vmem>>, vector<8x128xf32>
    %c0_1 = arith.constant 0 : index
    %c0_2 = arith.constant 0 : index
    %1 = vector.load %arg0[%c0_1, %c0_2] : memref<16x32xf32, #tpu.memory_space<vmem>>, vector<16x32xf32>
    %2 = vector.extract_strided_slice %0 {offsets = [0, 0], sizes = [1, 32], strides = [1, 1]} : vector<8x128xf32> to vector<1x32xf32>
    %3 = vector.extract_strided_slice %0 {offsets = [1, 0], sizes = [1, 32], strides = [1, 1]} : vector<8x128xf32> to vector<1x32xf32>
    %cst = arith.constant dense<0.000000e+00> : vector<16xf32>
    %4 = vector.multi_reduction <add>, %1, %cst [1] : vector<16x32xf32> to vector<16xf32>
    %5 = vector.shape_cast %4 : vector<16xf32> to vector<16x1xf32>
    %cst_3 = arith.constant 3.200000e+01 : f32
    %6 = vector.broadcast %cst_3 : f32 to vector<16x1xf32>
    %7 = arith.divf %5, %6 : vector<16x1xf32>
    %8 = vector.broadcast %7 : vector<16x1xf32> to vector<16x32xf32>
    %9 = arith.subf %1, %8 : vector<16x32xf32>
    %10 = arith.mulf %9, %9 : vector<16x32xf32>
    %cst_4 = arith.constant dense<0.000000e+00> : vector<16xf32>
    %11 = vector.multi_reduction <add>, %10, %cst_4 [1] : vector<16x32xf32> to vector<16xf32>
    %12 = vector.shape_cast %11 : vector<16xf32> to vector<16x1xf32>
    %cst_5 = arith.constant 3.200000e+01 : f32
    %13 = vector.broadcast %cst_5 : f32 to vector<16x1xf32>
    %14 = arith.divf %12, %13 : vector<16x1xf32>
    %cst_6 = arith.constant 9.99999996E-13 : f32
    %15 = vector.broadcast %cst_6 : f32 to vector<16x1xf32>
    %16 = arith.addf %14, %15 : vector<16x1xf32>
    %17 = math.rsqrt %16 : vector<16x1xf32>
    %18 = vector.broadcast %17 : vector<16x1xf32> to vector<16x32xf32>
    %19 = arith.mulf %9, %18 : vector<16x32xf32>
    %20 = vector.broadcast %2 : vector<1x32xf32> to vector<16x32xf32>
    %21 = arith.mulf %19, %20 : vector<16x32xf32>
    %22 = vector.broadcast %3 : vector<1x32xf32> to vector<16x32xf32>
    %23 = arith.addf %21, %22 : vector<16x32xf32>
    %c0_7 = arith.constant 0 : index
    %c0_8 = arith.constant 0 : index
    %24 = vector.load %arg1[%c0_7, %c0_8] : memref<16x16xf32, #tpu.memory_space<vmem>>, vector<16x16xf32>
    %c0_9 = arith.constant 0 : index
    %c0_10 = arith.constant 0 : index
    %c0_11 = arith.constant 0 : index
    %25 = vector.load %arg3[%c0_9, %c0_10, %c0_11] : memref<2x8x128xf32, #tpu.memory_space<vmem>>, vector<1x8x128xf32>
    %26 = vector.shape_cast %25 : vector<1x8x128xf32> to vector<8x128xf32>
    %c0_12 = arith.constant 0 : index
    %c0_13 = arith.constant 0 : index
    %c0_14 = arith.constant 0 : index
    %27 = vector.load %arg4[%c0_12, %c0_13, %c0_14] : memref<2x32x96xbf16, #tpu.memory_space<vmem>>, vector<1x32x96xbf16>
    %28 = vector.shape_cast %27 : vector<1x32x96xbf16> to vector<32x96xbf16>
    %29 = arith.truncf %23 : vector<16x32xf32> to vector<16x32xbf16>
    %cst_15 = arith.constant dense<0.000000e+00> : vector<16x96xf32>
    %30 = tpu.matmul %29, %28, %cst_15 {dimension_numbers = #tpu.dot_dimension_numbers<[1], [0], [0], [1], [0, 0, 1, 1], [], []>} : vector<16x32xbf16>, vector<32x96xbf16>, vector<16x96xf32> -> vector<16x96xf32>
    %31 = vector.extract_strided_slice %26 {offsets = [0, 0], sizes = [1, 96], strides = [1, 1]} : vector<8x128xf32> to vector<1x96xf32>
    %32 = vector.broadcast %31 : vector<1x96xf32> to vector<16x96xf32>
    %33 = arith.addf %30, %32 : vector<16x96xf32>
    %34 = arith.truncf %33 : vector<16x96xf32> to vector<16x96xbf16>
    %35 = vector.extract_strided_slice %34 {offsets = [0, 0], sizes = [16, 8], strides = [1, 1]} : vector<16x96xbf16> to vector<16x8xbf16>
    %36 = vector.extract_strided_slice %34 {offsets = [0, 32], sizes = [16, 8], strides = [1, 1]} : vector<16x96xbf16> to vector<16x8xbf16>
    %37 = vector.extract_strided_slice %34 {offsets = [0, 64], sizes = [16, 8], strides = [1, 1]} : vector<16x96xbf16> to vector<16x8xbf16>
    %cst_16 = arith.constant dense<0.000000e+00> : vector<16x16xf32>
    %38 = tpu.matmul %35, %36, %cst_16 {dimension_numbers = #tpu.dot_dimension_numbers<[1], [1], [0], [0], [0, 0, 1, 0], [], []>} : vector<16x8xbf16>, vector<16x8xbf16>, vector<16x16xf32> -> vector<16x16xf32>
    %cst_17 = arith.constant 0.353553385 : f32
    %39 = vector.broadcast %cst_17 : f32 to vector<16x16xf32>
    %40 = arith.mulf %38, %39 : vector<16x16xf32>
    %41 = arith.addf %40, %24 : vector<16x16xf32>
    %cst_18 = arith.constant dense<0xFF800000> : vector<16xf32>
    %42 = vector.multi_reduction <maximumf>, %41, %cst_18 [1] : vector<16x16xf32> to vector<16xf32>
    %43 = vector.shape_cast %42 : vector<16xf32> to vector<16x1xf32>
    %44 = vector.broadcast %43 : vector<16x1xf32> to vector<16x16xf32>
    %45 = arith.subf %41, %44 : vector<16x16xf32>
    %46 = math.exp %45 : vector<16x16xf32>
    %cst_19 = arith.constant dense<0.000000e+00> : vector<16xf32>
    %47 = vector.multi_reduction <add>, %46, %cst_19 [1] : vector<16x16xf32> to vector<16xf32>
    %48 = vector.shape_cast %47 : vector<16xf32> to vector<16x1xf32>
    %49 = tpu.reciprocal %48 {approx = true} : vector<16x1xf32> -> vector<16x1xf32>
    %50 = vector.broadcast %49 : vector<16x1xf32> to vector<16x16xf32>
    %51 = arith.mulf %46, %50 : vector<16x16xf32>
    %52 = arith.truncf %51 : vector<16x16xf32> to vector<16x16xbf16>
    %cst_20 = arith.constant dense<0.000000e+00> : vector<16x8xf32>
    %53 = tpu.matmul %52, %37, %cst_20 {dimension_numbers = #tpu.dot_dimension_numbers<[1], [0], [0], [1], [0, 0, 1, 1], [], []>} : vector<16x16xbf16>, vector<16x8xbf16>, vector<16x8xf32> -> vector<16x8xf32>
    %54 = vector.extract_strided_slice %34 {offsets = [0, 8], sizes = [16, 8], strides = [1, 1]} : vector<16x96xbf16> to vector<16x8xbf16>
    %55 = vector.extract_strided_slice %34 {offsets = [0, 40], sizes = [16, 8], strides = [1, 1]} : vector<16x96xbf16> to vector<16x8xbf16>
    %56 = vector.extract_strided_slice %34 {offsets = [0, 72], sizes = [16, 8], strides = [1, 1]} : vector<16x96xbf16> to vector<16x8xbf16>
    %cst_21 = arith.constant dense<0.000000e+00> : vector<16x16xf32>
    %57 = tpu.matmul %54, %55, %cst_21 {dimension_numbers = #tpu.dot_dimension_numbers<[1], [1], [0], [0], [0, 0, 1, 0], [], []>} : vector<16x8xbf16>, vector<16x8xbf16>, vector<16x16xf32> -> vector<16x16xf32>
    %cst_22 = arith.constant 0.353553385 : f32
    %58 = vector.broadcast %cst_22 : f32 to vector<16x16xf32>
    %59 = arith.mulf %57, %58 : vector<16x16xf32>
    %60 = arith.addf %59, %24 : vector<16x16xf32>
    %cst_23 = arith.constant dense<0xFF800000> : vector<16xf32>
    %61 = vector.multi_reduction <maximumf>, %60, %cst_23 [1] : vector<16x16xf32> to vector<16xf32>
    %62 = vector.shape_cast %61 : vector<16xf32> to vector<16x1xf32>
    %63 = vector.broadcast %62 : vector<16x1xf32> to vector<16x16xf32>
    %64 = arith.subf %60, %63 : vector<16x16xf32>
    %65 = math.exp %64 : vector<16x16xf32>
    %cst_24 = arith.constant dense<0.000000e+00> : vector<16xf32>
    %66 = vector.multi_reduction <add>, %65, %cst_24 [1] : vector<16x16xf32> to vector<16xf32>
    %67 = vector.shape_cast %66 : vector<16xf32> to vector<16x1xf32>
    %68 = tpu.reciprocal %67 {approx = true} : vector<16x1xf32> -> vector<16x1xf32>
    %69 = vector.broadcast %68 : vector<16x1xf32> to vector<16x16xf32>
    %70 = arith.mulf %65, %69 : vector<16x16xf32>
    %71 = arith.truncf %70 : vector<16x16xf32> to vector<16x16xbf16>
    %cst_25 = arith.constant dense<0.000000e+00> : vector<16x8xf32>
    %72 = tpu.matmul %71, %56, %cst_25 {dimension_numbers = #tpu.dot_dimension_numbers<[1], [0], [0], [1], [0, 0, 1, 1], [], []>} : vector<16x16xbf16>, vector<16x8xbf16>, vector<16x8xf32> -> vector<16x8xf32>
    %73 = vector.extract_strided_slice %34 {offsets = [0, 16], sizes = [16, 8], strides = [1, 1]} : vector<16x96xbf16> to vector<16x8xbf16>
    %74 = vector.extract_strided_slice %34 {offsets = [0, 48], sizes = [16, 8], strides = [1, 1]} : vector<16x96xbf16> to vector<16x8xbf16>
    %75 = vector.extract_strided_slice %34 {offsets = [0, 80], sizes = [16, 8], strides = [1, 1]} : vector<16x96xbf16> to vector<16x8xbf16>
    %cst_26 = arith.constant dense<0.000000e+00> : vector<16x16xf32>
    %76 = tpu.matmul %73, %74, %cst_26 {dimension_numbers = #tpu.dot_dimension_numbers<[1], [1], [0], [0], [0, 0, 1, 0], [], []>} : vector<16x8xbf16>, vector<16x8xbf16>, vector<16x16xf32> -> vector<16x16xf32>
    %cst_27 = arith.constant 0.353553385 : f32
    %77 = vector.broadcast %cst_27 : f32 to vector<16x16xf32>
    %78 = arith.mulf %76, %77 : vector<16x16xf32>
    %79 = arith.addf %78, %24 : vector<16x16xf32>
    %cst_28 = arith.constant dense<0xFF800000> : vector<16xf32>
    %80 = vector.multi_reduction <maximumf>, %79, %cst_28 [1] : vector<16x16xf32> to vector<16xf32>
    %81 = vector.shape_cast %80 : vector<16xf32> to vector<16x1xf32>
    %82 = vector.broadcast %81 : vector<16x1xf32> to vector<16x16xf32>
    %83 = arith.subf %79, %82 : vector<16x16xf32>
    %84 = math.exp %83 : vector<16x16xf32>
    %cst_29 = arith.constant dense<0.000000e+00> : vector<16xf32>
    %85 = vector.multi_reduction <add>, %84, %cst_29 [1] : vector<16x16xf32> to vector<16xf32>
    %86 = vector.shape_cast %85 : vector<16xf32> to vector<16x1xf32>
    %87 = tpu.reciprocal %86 {approx = true} : vector<16x1xf32> -> vector<16x1xf32>
    %88 = vector.broadcast %87 : vector<16x1xf32> to vector<16x16xf32>
    %89 = arith.mulf %84, %88 : vector<16x16xf32>
    %90 = arith.truncf %89 : vector<16x16xf32> to vector<16x16xbf16>
    %cst_30 = arith.constant dense<0.000000e+00> : vector<16x8xf32>
    %91 = tpu.matmul %90, %75, %cst_30 {dimension_numbers = #tpu.dot_dimension_numbers<[1], [0], [0], [1], [0, 0, 1, 1], [], []>} : vector<16x16xbf16>, vector<16x8xbf16>, vector<16x8xf32> -> vector<16x8xf32>
    %92 = vector.extract_strided_slice %34 {offsets = [0, 24], sizes = [16, 8], strides = [1, 1]} : vector<16x96xbf16> to vector<16x8xbf16>
    %93 = vector.extract_strided_slice %34 {offsets = [0, 56], sizes = [16, 8], strides = [1, 1]} : vector<16x96xbf16> to vector<16x8xbf16>
    %94 = vector.extract_strided_slice %34 {offsets = [0, 88], sizes = [16, 8], strides = [1, 1]} : vector<16x96xbf16> to vector<16x8xbf16>
    %cst_31 = arith.constant dense<0.000000e+00> : vector<16x16xf32>
    %95 = tpu.matmul %92, %93, %cst_31 {dimension_numbers = #tpu.dot_dimension_numbers<[1], [1], [0], [0], [0, 0, 1, 0], [], []>} : vector<16x8xbf16>, vector<16x8xbf16>, vector<16x16xf32> -> vector<16x16xf32>
    %cst_32 = arith.constant 0.353553385 : f32
    %96 = vector.broadcast %cst_32 : f32 to vector<16x16xf32>
    %97 = arith.mulf %95, %96 : vector<16x16xf32>
    %98 = arith.addf %97, %24 : vector<16x16xf32>
    %cst_33 = arith.constant dense<0xFF800000> : vector<16xf32>
    %99 = vector.multi_reduction <maximumf>, %98, %cst_33 [1] : vector<16x16xf32> to vector<16xf32>
    %100 = vector.shape_cast %99 : vector<16xf32> to vector<16x1xf32>
    %101 = vector.broadcast %100 : vector<16x1xf32> to vector<16x16xf32>
    %102 = arith.subf %98, %101 : vector<16x16xf32>
    %103 = math.exp %102 : vector<16x16xf32>
    %cst_34 = arith.constant dense<0.000000e+00> : vector<16xf32>
    %104 = vector.multi_reduction <add>, %103, %cst_34 [1] : vector<16x16xf32> to vector<16xf32>
    %105 = vector.shape_cast %104 : vector<16xf32> to vector<16x1xf32>
    %106 = tpu.reciprocal %105 {approx = true} : vector<16x1xf32> -> vector<16x1xf32>
    %107 = vector.broadcast %106 : vector<16x1xf32> to vector<16x16xf32>
    %108 = arith.mulf %103, %107 : vector<16x16xf32>
    %109 = arith.truncf %108 : vector<16x16xf32> to vector<16x16xbf16>
    %cst_35 = arith.constant dense<0.000000e+00> : vector<16x8xf32>
    %110 = tpu.matmul %109, %94, %cst_35 {dimension_numbers = #tpu.dot_dimension_numbers<[1], [0], [0], [1], [0, 0, 1, 1], [], []>} : vector<16x16xbf16>, vector<16x8xbf16>, vector<16x8xf32> -> vector<16x8xf32>
    %111 = tpu.concatenate %53, %72, %91, %110 in 1 : vector<16x8xf32>, vector<16x8xf32>, vector<16x8xf32>, vector<16x8xf32> -> vector<16x32xf32>
    %c0_36 = arith.constant 0 : index
    %c0_37 = arith.constant 0 : index
    %c0_38 = arith.constant 0 : index
    %112 = vector.load %arg5[%c0_36, %c0_37, %c0_38] : memref<2x32x32xbf16, #tpu.memory_space<vmem>>, vector<1x32x32xbf16>
    %113 = vector.shape_cast %112 : vector<1x32x32xbf16> to vector<32x32xbf16>
    %114 = arith.truncf %111 : vector<16x32xf32> to vector<16x32xbf16>
    %cst_39 = arith.constant dense<0.000000e+00> : vector<16x32xf32>
    %115 = tpu.matmul %114, %113, %cst_39 {dimension_numbers = #tpu.dot_dimension_numbers<[1], [0], [0], [1], [0, 0, 1, 1], [], []>} : vector<16x32xbf16>, vector<32x32xbf16>, vector<16x32xf32> -> vector<16x32xf32>
    %116 = vector.extract_strided_slice %26 {offsets = [1, 0], sizes = [1, 32], strides = [1, 1]} : vector<8x128xf32> to vector<1x32xf32>
    %117 = vector.broadcast %116 : vector<1x32xf32> to vector<16x32xf32>
    %118 = arith.addf %115, %117 : vector<16x32xf32>
    %119 = arith.addf %118, %23 : vector<16x32xf32>
    %120 = vector.extract_strided_slice %26 {offsets = [2, 0], sizes = [1, 32], strides = [1, 1]} : vector<8x128xf32> to vector<1x32xf32>
    %121 = vector.extract_strided_slice %26 {offsets = [3, 0], sizes = [1, 32], strides = [1, 1]} : vector<8x128xf32> to vector<1x32xf32>
    %cst_40 = arith.constant dense<0.000000e+00> : vector<16xf32>
    %122 = vector.multi_reduction <add>, %119, %cst_40 [1] : vector<16x32xf32> to vector<16xf32>
    %123 = vector.shape_cast %122 : vector<16xf32> to vector<16x1xf32>
    %cst_41 = arith.constant 3.200000e+01 : f32
    %124 = vector.broadcast %cst_41 : f32 to vector<16x1xf32>
    %125 = arith.divf %123, %124 : vector<16x1xf32>
    %126 = vector.broadcast %125 : vector<16x1xf32> to vector<16x32xf32>
    %127 = arith.subf %119, %126 : vector<16x32xf32>
    %128 = arith.mulf %127, %127 : vector<16x32xf32>
    %cst_42 = arith.constant dense<0.000000e+00> : vector<16xf32>
    %129 = vector.multi_reduction <add>, %128, %cst_42 [1] : vector<16x32xf32> to vector<16xf32>
    %130 = vector.shape_cast %129 : vector<16xf32> to vector<16x1xf32>
    %cst_43 = arith.constant 3.200000e+01 : f32
    %131 = vector.broadcast %cst_43 : f32 to vector<16x1xf32>
    %132 = arith.divf %130, %131 : vector<16x1xf32>
    %cst_44 = arith.constant 9.99999996E-13 : f32
    %133 = vector.broadcast %cst_44 : f32 to vector<16x1xf32>
    %134 = arith.addf %132, %133 : vector<16x1xf32>
    %135 = math.rsqrt %134 : vector<16x1xf32>
    %136 = vector.broadcast %135 : vector<16x1xf32> to vector<16x32xf32>
    %137 = arith.mulf %127, %136 : vector<16x32xf32>
    %138 = vector.broadcast %120 : vector<1x32xf32> to vector<16x32xf32>
    %139 = arith.mulf %137, %138 : vector<16x32xf32>
    %140 = vector.broadcast %121 : vector<1x32xf32> to vector<16x32xf32>
    %141 = arith.addf %139, %140 : vector<16x32xf32>
    %c0_45 = arith.constant 0 : index
    %c0_46 = arith.constant 0 : index
    %c0_47 = arith.constant 0 : index
    %142 = vector.load %arg6[%c0_45, %c0_46, %c0_47] : memref<2x32x64xbf16, #tpu.memory_space<vmem>>, vector<1x32x64xbf16>
    %143 = vector.shape_cast %142 : vector<1x32x64xbf16> to vector<32x64xbf16>
    %144 = arith.truncf %141 : vector<16x32xf32> to vector<16x32xbf16>
    %cst_48 = arith.constant dense<0.000000e+00> : vector<16x64xf32>
    %145 = tpu.matmul %144, %143, %cst_48 {dimension_numbers = #tpu.dot_dimension_numbers<[1], [0], [0], [1], [0, 0, 1, 1], [], []>} : vector<16x32xbf16>, vector<32x64xbf16>, vector<16x64xf32> -> vector<16x64xf32>
    %146 = vector.extract_strided_slice %26 {offsets = [4, 0], sizes = [1, 64], strides = [1, 1]} : vector<8x128xf32> to vector<1x64xf32>
    %147 = vector.broadcast %146 : vector<1x64xf32> to vector<16x64xf32>
    %148 = arith.addf %145, %147 : vector<16x64xf32>
    %cst_49 = arith.constant 5.000000e-01 : f32
    %149 = vector.broadcast %cst_49 : f32 to vector<16x64xf32>
    %150 = arith.mulf %149, %148 : vector<16x64xf32>
    %cst_50 = arith.constant 4.471500e-02 : f32
    %151 = vector.broadcast %cst_50 : f32 to vector<16x64xf32>
    %152 = arith.mulf %151, %148 : vector<16x64xf32>
    %153 = arith.mulf %152, %148 : vector<16x64xf32>
    %154 = arith.mulf %153, %148 : vector<16x64xf32>
    %155 = arith.addf %148, %154 : vector<16x64xf32>
    %cst_51 = arith.constant 0.797884583 : f32
    %156 = vector.broadcast %cst_51 : f32 to vector<16x64xf32>
    %157 = arith.mulf %156, %155 : vector<16x64xf32>
    %158 = math.tanh %157 : vector<16x64xf32>
    %cst_52 = arith.constant 1.000000e+00 : f32
    %159 = vector.broadcast %cst_52 : f32 to vector<16x64xf32>
    %160 = arith.addf %159, %158 : vector<16x64xf32>
    %161 = arith.mulf %150, %160 : vector<16x64xf32>
    %c0_53 = arith.constant 0 : index
    %c0_54 = arith.constant 0 : index
    %c0_55 = arith.constant 0 : index
    %162 = vector.load %arg7[%c0_53, %c0_54, %c0_55] : memref<2x64x32xbf16, #tpu.memory_space<vmem>>, vector<1x64x32xbf16>
    %163 = vector.shape_cast %162 : vector<1x64x32xbf16> to vector<64x32xbf16>
    %164 = arith.truncf %161 : vector<16x64xf32> to vector<16x64xbf16>
    %cst_56 = arith.constant dense<0.000000e+00> : vector<16x32xf32>
    %165 = tpu.matmul %164, %163, %cst_56 {dimension_numbers = #tpu.dot_dimension_numbers<[1], [0], [0], [1], [0, 0, 1, 1], [], []>} : vector<16x64xbf16>, vector<64x32xbf16>, vector<16x32xf32> -> vector<16x32xf32>
    %166 = vector.extract_strided_slice %26 {offsets = [5, 0], sizes = [1, 32], strides = [1, 1]} : vector<8x128xf32> to vector<1x32xf32>
    %167 = vector.broadcast %166 : vector<1x32xf32> to vector<16x32xf32>
    %168 = arith.addf %165, %167 : vector<16x32xf32>
    %169 = arith.addf %168, %141 : vector<16x32xf32>
    %170 = vector.extract_strided_slice %26 {offsets = [6, 0], sizes = [1, 32], strides = [1, 1]} : vector<8x128xf32> to vector<1x32xf32>
    %171 = vector.extract_strided_slice %26 {offsets = [7, 0], sizes = [1, 32], strides = [1, 1]} : vector<8x128xf32> to vector<1x32xf32>
    %cst_57 = arith.constant dense<0.000000e+00> : vector<16xf32>
    %172 = vector.multi_reduction <add>, %169, %cst_57 [1] : vector<16x32xf32> to vector<16xf32>
    %173 = vector.shape_cast %172 : vector<16xf32> to vector<16x1xf32>
    %cst_58 = arith.constant 3.200000e+01 : f32
    %174 = vector.broadcast %cst_58 : f32 to vector<16x1xf32>
    %175 = arith.divf %173, %174 : vector<16x1xf32>
    %176 = vector.broadcast %175 : vector<16x1xf32> to vector<16x32xf32>
    %177 = arith.subf %169, %176 : vector<16x32xf32>
    %178 = arith.mulf %177, %177 : vector<16x32xf32>
    %cst_59 = arith.constant dense<0.000000e+00> : vector<16xf32>
    %179 = vector.multi_reduction <add>, %178, %cst_59 [1] : vector<16x32xf32> to vector<16xf32>
    %180 = vector.shape_cast %179 : vector<16xf32> to vector<16x1xf32>
    %cst_60 = arith.constant 3.200000e+01 : f32
    %181 = vector.broadcast %cst_60 : f32 to vector<16x1xf32>
    %182 = arith.divf %180, %181 : vector<16x1xf32>
    %cst_61 = arith.constant 9.99999996E-13 : f32
    %183 = vector.broadcast %cst_61 : f32 to vector<16x1xf32>
    %184 = arith.addf %182, %183 : vector<16x1xf32>
    %185 = math.rsqrt %184 : vector<16x1xf32>
    %186 = vector.broadcast %185 : vector<16x1xf32> to vector<16x32xf32>
    %187 = arith.mulf %177, %186 : vector<16x32xf32>
    %188 = vector.broadcast %170 : vector<1x32xf32> to vector<16x32xf32>
    %189 = arith.mulf %187, %188 : vector<16x32xf32>
    %190 = vector.broadcast %171 : vector<1x32xf32> to vector<16x32xf32>
    %191 = arith.addf %189, %190 : vector<16x32xf32>
    %c1 = arith.constant 1 : index
    %c0_62 = arith.constant 0 : index
    %c0_63 = arith.constant 0 : index
    %192 = vector.load %arg3[%c1, %c0_62, %c0_63] : memref<2x8x128xf32, #tpu.memory_space<vmem>>, vector<1x8x128xf32>
    %193 = vector.shape_cast %192 : vector<1x8x128xf32> to vector<8x128xf32>
    %c1_64 = arith.constant 1 : index
    %c0_65 = arith.constant 0 : index
    %c0_66 = arith.constant 0 : index
    %194 = vector.load %arg4[%c1_64, %c0_65, %c0_66] : memref<2x32x96xbf16, #tpu.memory_space<vmem>>, vector<1x32x96xbf16>
    %195 = vector.shape_cast %194 : vector<1x32x96xbf16> to vector<32x96xbf16>
    %196 = arith.truncf %191 : vector<16x32xf32> to vector<16x32xbf16>
    %cst_67 = arith.constant dense<0.000000e+00> : vector<16x96xf32>
    %197 = tpu.matmul %196, %195, %cst_67 {dimension_numbers = #tpu.dot_dimension_numbers<[1], [0], [0], [1], [0, 0, 1, 1], [], []>} : vector<16x32xbf16>, vector<32x96xbf16>, vector<16x96xf32> -> vector<16x96xf32>
    %198 = vector.extract_strided_slice %193 {offsets = [0, 0], sizes = [1, 96], strides = [1, 1]} : vector<8x128xf32> to vector<1x96xf32>
    %199 = vector.broadcast %198 : vector<1x96xf32> to vector<16x96xf32>
    %200 = arith.addf %197, %199 : vector<16x96xf32>
    %201 = arith.truncf %200 : vector<16x96xf32> to vector<16x96xbf16>
    %202 = vector.extract_strided_slice %201 {offsets = [0, 0], sizes = [16, 8], strides = [1, 1]} : vector<16x96xbf16> to vector<16x8xbf16>
    %203 = vector.extract_strided_slice %201 {offsets = [0, 32], sizes = [16, 8], strides = [1, 1]} : vector<16x96xbf16> to vector<16x8xbf16>
    %204 = vector.extract_strided_slice %201 {offsets = [0, 64], sizes = [16, 8], strides = [1, 1]} : vector<16x96xbf16> to vector<16x8xbf16>
    %cst_68 = arith.constant dense<0.000000e+00> : vector<16x16xf32>
    %205 = tpu.matmul %202, %203, %cst_68 {dimension_numbers = #tpu.dot_dimension_numbers<[1], [1], [0], [0], [0, 0, 1, 0], [], []>} : vector<16x8xbf16>, vector<16x8xbf16>, vector<16x16xf32> -> vector<16x16xf32>
    %cst_69 = arith.constant 0.353553385 : f32
    %206 = vector.broadcast %cst_69 : f32 to vector<16x16xf32>
    %207 = arith.mulf %205, %206 : vector<16x16xf32>
    %208 = arith.addf %207, %24 : vector<16x16xf32>
    %cst_70 = arith.constant dense<0xFF800000> : vector<16xf32>
    %209 = vector.multi_reduction <maximumf>, %208, %cst_70 [1] : vector<16x16xf32> to vector<16xf32>
    %210 = vector.shape_cast %209 : vector<16xf32> to vector<16x1xf32>
    %211 = vector.broadcast %210 : vector<16x1xf32> to vector<16x16xf32>
    %212 = arith.subf %208, %211 : vector<16x16xf32>
    %213 = math.exp %212 : vector<16x16xf32>
    %cst_71 = arith.constant dense<0.000000e+00> : vector<16xf32>
    %214 = vector.multi_reduction <add>, %213, %cst_71 [1] : vector<16x16xf32> to vector<16xf32>
    %215 = vector.shape_cast %214 : vector<16xf32> to vector<16x1xf32>
    %216 = tpu.reciprocal %215 {approx = true} : vector<16x1xf32> -> vector<16x1xf32>
    %217 = vector.broadcast %216 : vector<16x1xf32> to vector<16x16xf32>
    %218 = arith.mulf %213, %217 : vector<16x16xf32>
    %219 = arith.truncf %218 : vector<16x16xf32> to vector<16x16xbf16>
    %cst_72 = arith.constant dense<0.000000e+00> : vector<16x8xf32>
    %220 = tpu.matmul %219, %204, %cst_72 {dimension_numbers = #tpu.dot_dimension_numbers<[1], [0], [0], [1], [0, 0, 1, 1], [], []>} : vector<16x16xbf16>, vector<16x8xbf16>, vector<16x8xf32> -> vector<16x8xf32>
    %221 = vector.extract_strided_slice %201 {offsets = [0, 8], sizes = [16, 8], strides = [1, 1]} : vector<16x96xbf16> to vector<16x8xbf16>
    %222 = vector.extract_strided_slice %201 {offsets = [0, 40], sizes = [16, 8], strides = [1, 1]} : vector<16x96xbf16> to vector<16x8xbf16>
    %223 = vector.extract_strided_slice %201 {offsets = [0, 72], sizes = [16, 8], strides = [1, 1]} : vector<16x96xbf16> to vector<16x8xbf16>
    %cst_73 = arith.constant dense<0.000000e+00> : vector<16x16xf32>
    %224 = tpu.matmul %221, %222, %cst_73 {dimension_numbers = #tpu.dot_dimension_numbers<[1], [1], [0], [0], [0, 0, 1, 0], [], []>} : vector<16x8xbf16>, vector<16x8xbf16>, vector<16x16xf32> -> vector<16x16xf32>
    %cst_74 = arith.constant 0.353553385 : f32
    %225 = vector.broadcast %cst_74 : f32 to vector<16x16xf32>
    %226 = arith.mulf %224, %225 : vector<16x16xf32>
    %227 = arith.addf %226, %24 : vector<16x16xf32>
    %cst_75 = arith.constant dense<0xFF800000> : vector<16xf32>
    %228 = vector.multi_reduction <maximumf>, %227, %cst_75 [1] : vector<16x16xf32> to vector<16xf32>
    %229 = vector.shape_cast %228 : vector<16xf32> to vector<16x1xf32>
    %230 = vector.broadcast %229 : vector<16x1xf32> to vector<16x16xf32>
    %231 = arith.subf %227, %230 : vector<16x16xf32>
    %232 = math.exp %231 : vector<16x16xf32>
    %cst_76 = arith.constant dense<0.000000e+00> : vector<16xf32>
    %233 = vector.multi_reduction <add>, %232, %cst_76 [1] : vector<16x16xf32> to vector<16xf32>
    %234 = vector.shape_cast %233 : vector<16xf32> to vector<16x1xf32>
    %235 = tpu.reciprocal %234 {approx = true} : vector<16x1xf32> -> vector<16x1xf32>
    %236 = vector.broadcast %235 : vector<16x1xf32> to vector<16x16xf32>
    %237 = arith.mulf %232, %236 : vector<16x16xf32>
    %238 = arith.truncf %237 : vector<16x16xf32> to vector<16x16xbf16>
    %cst_77 = arith.constant dense<0.000000e+00> : vector<16x8xf32>
    %239 = tpu.matmul %238, %223, %cst_77 {dimension_numbers = #tpu.dot_dimension_numbers<[1], [0], [0], [1], [0, 0, 1, 1], [], []>} : vector<16x16xbf16>, vector<16x8xbf16>, vector<16x8xf32> -> vector<16x8xf32>
    %240 = vector.extract_strided_slice %201 {offsets = [0, 16], sizes = [16, 8], strides = [1, 1]} : vector<16x96xbf16> to vector<16x8xbf16>
    %241 = vector.extract_strided_slice %201 {offsets = [0, 48], sizes = [16, 8], strides = [1, 1]} : vector<16x96xbf16> to vector<16x8xbf16>
    %242 = vector.extract_strided_slice %201 {offsets = [0, 80], sizes = [16, 8], strides = [1, 1]} : vector<16x96xbf16> to vector<16x8xbf16>
    %cst_78 = arith.constant dense<0.000000e+00> : vector<16x16xf32>
    %243 = tpu.matmul %240, %241, %cst_78 {dimension_numbers = #tpu.dot_dimension_numbers<[1], [1], [0], [0], [0, 0, 1, 0], [], []>} : vector<16x8xbf16>, vector<16x8xbf16>, vector<16x16xf32> -> vector<16x16xf32>
    %cst_79 = arith.constant 0.353553385 : f32
    %244 = vector.broadcast %cst_79 : f32 to vector<16x16xf32>
    %245 = arith.mulf %243, %244 : vector<16x16xf32>
    %246 = arith.addf %245, %24 : vector<16x16xf32>
    %cst_80 = arith.constant dense<0xFF800000> : vector<16xf32>
    %247 = vector.multi_reduction <maximumf>, %246, %cst_80 [1] : vector<16x16xf32> to vector<16xf32>
    %248 = vector.shape_cast %247 : vector<16xf32> to vector<16x1xf32>
    %249 = vector.broadcast %248 : vector<16x1xf32> to vector<16x16xf32>
    %250 = arith.subf %246, %249 : vector<16x16xf32>
    %251 = math.exp %250 : vector<16x16xf32>
    %cst_81 = arith.constant dense<0.000000e+00> : vector<16xf32>
    %252 = vector.multi_reduction <add>, %251, %cst_81 [1] : vector<16x16xf32> to vector<16xf32>
    %253 = vector.shape_cast %252 : vector<16xf32> to vector<16x1xf32>
    %254 = tpu.reciprocal %253 {approx = true} : vector<16x1xf32> -> vector<16x1xf32>
    %255 = vector.broadcast %254 : vector<16x1xf32> to vector<16x16xf32>
    %256 = arith.mulf %251, %255 : vector<16x16xf32>
    %257 = arith.truncf %256 : vector<16x16xf32> to vector<16x16xbf16>
    %cst_82 = arith.constant dense<0.000000e+00> : vector<16x8xf32>
    %258 = tpu.matmul %257, %242, %cst_82 {dimension_numbers = #tpu.dot_dimension_numbers<[1], [0], [0], [1], [0, 0, 1, 1], [], []>} : vector<16x16xbf16>, vector<16x8xbf16>, vector<16x8xf32> -> vector<16x8xf32>
    %259 = vector.extract_strided_slice %201 {offsets = [0, 24], sizes = [16, 8], strides = [1, 1]} : vector<16x96xbf16> to vector<16x8xbf16>
    %260 = vector.extract_strided_slice %201 {offsets = [0, 56], sizes = [16, 8], strides = [1, 1]} : vector<16x96xbf16> to vector<16x8xbf16>
    %261 = vector.extract_strided_slice %201 {offsets = [0, 88], sizes = [16, 8], strides = [1, 1]} : vector<16x96xbf16> to vector<16x8xbf16>
    %cst_83 = arith.constant dense<0.000000e+00> : vector<16x16xf32>
    %262 = tpu.matmul %259, %260, %cst_83 {dimension_numbers = #tpu.dot_dimension_numbers<[1], [1], [0], [0], [0, 0, 1, 0], [], []>} : vector<16x8xbf16>, vector<16x8xbf16>, vector<16x16xf32> -> vector<16x16xf32>
    %cst_84 = arith.constant 0.353553385 : f32
    %263 = vector.broadcast %cst_84 : f32 to vector<16x16xf32>
    %264 = arith.mulf %262, %263 : vector<16x16xf32>
    %265 = arith.addf %264, %24 : vector<16x16xf32>
    %cst_85 = arith.constant dense<0xFF800000> : vector<16xf32>
    %266 = vector.multi_reduction <maximumf>, %265, %cst_85 [1] : vector<16x16xf32> to vector<16xf32>
    %267 = vector.shape_cast %266 : vector<16xf32> to vector<16x1xf32>
    %268 = vector.broadcast %267 : vector<16x1xf32> to vector<16x16xf32>
    %269 = arith.subf %265, %268 : vector<16x16xf32>
    %270 = math.exp %269 : vector<16x16xf32>
    %cst_86 = arith.constant dense<0.000000e+00> : vector<16xf32>
    %271 = vector.multi_reduction <add>, %270, %cst_86 [1] : vector<16x16xf32> to vector<16xf32>
    %272 = vector.shape_cast %271 : vector<16xf32> to vector<16x1xf32>
    %273 = tpu.reciprocal %272 {approx = true} : vector<16x1xf32> -> vector<16x1xf32>
    %274 = vector.broadcast %273 : vector<16x1xf32> to vector<16x16xf32>
    %275 = arith.mulf %270, %274 : vector<16x16xf32>
    %276 = arith.truncf %275 : vector<16x16xf32> to vector<16x16xbf16>
    %cst_87 = arith.constant dense<0.000000e+00> : vector<16x8xf32>
    %277 = tpu.matmul %276, %261, %cst_87 {dimension_numbers = #tpu.dot_dimension_numbers<[1], [0], [0], [1], [0, 0, 1, 1], [], []>} : vector<16x16xbf16>, vector<16x8xbf16>, vector<16x8xf32> -> vector<16x8xf32>
    %278 = tpu.concatenate %220, %239, %258, %277 in 1 : vector<16x8xf32>, vector<16x8xf32>, vector<16x8xf32>, vector<16x8xf32> -> vector<16x32xf32>
    %c1_88 = arith.constant 1 : index
    %c0_89 = arith.constant 0 : index
    %c0_90 = arith.constant 0 : index
    %279 = vector.load %arg5[%c1_88, %c0_89, %c0_90] : memref<2x32x32xbf16, #tpu.memory_space<vmem>>, vector<1x32x32xbf16>
    %280 = vector.shape_cast %279 : vector<1x32x32xbf16> to vector<32x32xbf16>
    %281 = arith.truncf %278 : vector<16x32xf32> to vector<16x32xbf16>
    %cst_91 = arith.constant dense<0.000000e+00> : vector<16x32xf32>
    %282 = tpu.matmul %281, %280, %cst_91 {dimension_numbers = #tpu.dot_dimension_numbers<[1], [0], [0], [1], [0, 0, 1, 1], [], []>} : vector<16x32xbf16>, vector<32x32xbf16>, vector<16x32xf32> -> vector<16x32xf32>
    %283 = vector.extract_strided_slice %193 {offsets = [1, 0], sizes = [1, 32], strides = [1, 1]} : vector<8x128xf32> to vector<1x32xf32>
    %284 = vector.broadcast %283 : vector<1x32xf32> to vector<16x32xf32>
    %285 = arith.addf %282, %284 : vector<16x32xf32>
    %286 = arith.addf %285, %191 : vector<16x32xf32>
    %287 = vector.extract_strided_slice %193 {offsets = [2, 0], sizes = [1, 32], strides = [1, 1]} : vector<8x128xf32> to vector<1x32xf32>
    %288 = vector.extract_strided_slice %193 {offsets = [3, 0], sizes = [1, 32], strides = [1, 1]} : vector<8x128xf32> to vector<1x32xf32>
    %cst_92 = arith.constant dense<0.000000e+00> : vector<16xf32>
    %289 = vector.multi_reduction <add>, %286, %cst_92 [1] : vector<16x32xf32> to vector<16xf32>
    %290 = vector.shape_cast %289 : vector<16xf32> to vector<16x1xf32>
    %cst_93 = arith.constant 3.200000e+01 : f32
    %291 = vector.broadcast %cst_93 : f32 to vector<16x1xf32>
    %292 = arith.divf %290, %291 : vector<16x1xf32>
    %293 = vector.broadcast %292 : vector<16x1xf32> to vector<16x32xf32>
    %294 = arith.subf %286, %293 : vector<16x32xf32>
    %295 = arith.mulf %294, %294 : vector<16x32xf32>
    %cst_94 = arith.constant dense<0.000000e+00> : vector<16xf32>
    %296 = vector.multi_reduction <add>, %295, %cst_94 [1] : vector<16x32xf32> to vector<16xf32>
    %297 = vector.shape_cast %296 : vector<16xf32> to vector<16x1xf32>
    %cst_95 = arith.constant 3.200000e+01 : f32
    %298 = vector.broadcast %cst_95 : f32 to vector<16x1xf32>
    %299 = arith.divf %297, %298 : vector<16x1xf32>
    %cst_96 = arith.constant 9.99999996E-13 : f32
    %300 = vector.broadcast %cst_96 : f32 to vector<16x1xf32>
    %301 = arith.addf %299, %300 : vector<16x1xf32>
    %302 = math.rsqrt %301 : vector<16x1xf32>
    %303 = vector.broadcast %302 : vector<16x1xf32> to vector<16x32xf32>
    %304 = arith.mulf %294, %303 : vector<16x32xf32>
    %305 = vector.broadcast %287 : vector<1x32xf32> to vector<16x32xf32>
    %306 = arith.mulf %304, %305 : vector<16x32xf32>
    %307 = vector.broadcast %288 : vector<1x32xf32> to vector<16x32xf32>
    %308 = arith.addf %306, %307 : vector<16x32xf32>
    %c1_97 = arith.constant 1 : index
    %c0_98 = arith.constant 0 : index
    %c0_99 = arith.constant 0 : index
    %309 = vector.load %arg6[%c1_97, %c0_98, %c0_99] : memref<2x32x64xbf16, #tpu.memory_space<vmem>>, vector<1x32x64xbf16>
    %310 = vector.shape_cast %309 : vector<1x32x64xbf16> to vector<32x64xbf16>
    %311 = arith.truncf %308 : vector<16x32xf32> to vector<16x32xbf16>
    %cst_100 = arith.constant dense<0.000000e+00> : vector<16x64xf32>
    %312 = tpu.matmul %311, %310, %cst_100 {dimension_numbers = #tpu.dot_dimension_numbers<[1], [0], [0], [1], [0, 0, 1, 1], [], []>} : vector<16x32xbf16>, vector<32x64xbf16>, vector<16x64xf32> -> vector<16x64xf32>
    %313 = vector.extract_strided_slice %193 {offsets = [4, 0], sizes = [1, 64], strides = [1, 1]} : vector<8x128xf32> to vector<1x64xf32>
    %314 = vector.broadcast %313 : vector<1x64xf32> to vector<16x64xf32>
    %315 = arith.addf %312, %314 : vector<16x64xf32>
    %cst_101 = arith.constant 5.000000e-01 : f32
    %316 = vector.broadcast %cst_101 : f32 to vector<16x64xf32>
    %317 = arith.mulf %316, %315 : vector<16x64xf32>
    %cst_102 = arith.constant 4.471500e-02 : f32
    %318 = vector.broadcast %cst_102 : f32 to vector<16x64xf32>
    %319 = arith.mulf %318, %315 : vector<16x64xf32>
    %320 = arith.mulf %319, %315 : vector<16x64xf32>
    %321 = arith.mulf %320, %315 : vector<16x64xf32>
    %322 = arith.addf %315, %321 : vector<16x64xf32>
    %cst_103 = arith.constant 0.797884583 : f32
    %323 = vector.broadcast %cst_103 : f32 to vector<16x64xf32>
    %324 = arith.mulf %323, %322 : vector<16x64xf32>
    %325 = math.tanh %324 : vector<16x64xf32>
    %cst_104 = arith.constant 1.000000e+00 : f32
    %326 = vector.broadcast %cst_104 : f32 to vector<16x64xf32>
    %327 = arith.addf %326, %325 : vector<16x64xf32>
    %328 = arith.mulf %317, %327 : vector<16x64xf32>
    %c1_105 = arith.constant 1 : index
    %c0_106 = arith.constant 0 : index
    %c0_107 = arith.constant 0 : index
    %329 = vector.load %arg7[%c1_105, %c0_106, %c0_107] : memref<2x64x32xbf16, #tpu.memory_space<vmem>>, vector<1x64x32xbf16>
    %330 = vector.shape_cast %329 : vector<1x64x32xbf16> to vector<64x32xbf16>
    %331 = arith.truncf %328 : vector<16x64xf32> to vector<16x64xbf16>
    %cst_108 = arith.constant dense<0.000000e+00> : vector<16x32xf32>
    %332 = tpu.matmul %331, %330, %cst_108 {dimension_numbers = #tpu.dot_dimension_numbers<[1], [0], [0], [1], [0, 0, 1, 1], [], []>} : vector<16x64xbf16>, vector<64x32xbf16>, vector<16x32xf32> -> vector<16x32xf32>
    %333 = vector.extract_strided_slice %193 {offsets = [5, 0], sizes = [1, 32], strides = [1, 1]} : vector<8x128xf32> to vector<1x32xf32>
    %334 = vector.broadcast %333 : vector<1x32xf32> to vector<16x32xf32>
    %335 = arith.addf %332, %334 : vector<16x32xf32>
    %336 = arith.addf %335, %308 : vector<16x32xf32>
    %337 = vector.extract_strided_slice %193 {offsets = [6, 0], sizes = [1, 32], strides = [1, 1]} : vector<8x128xf32> to vector<1x32xf32>
    %338 = vector.extract_strided_slice %193 {offsets = [7, 0], sizes = [1, 32], strides = [1, 1]} : vector<8x128xf32> to vector<1x32xf32>
    %cst_109 = arith.constant dense<0.000000e+00> : vector<16xf32>
    %339 = vector.multi_reduction <add>, %336, %cst_109 [1] : vector<16x32xf32> to vector<16xf32>
    %340 = vector.shape_cast %339 : vector<16xf32> to vector<16x1xf32>
    %cst_110 = arith.constant 3.200000e+01 : f32
    %341 = vector.broadcast %cst_110 : f32 to vector<16x1xf32>
    %342 = arith.divf %340, %341 : vector<16x1xf32>
    %343 = vector.broadcast %342 : vector<16x1xf32> to vector<16x32xf32>
    %344 = arith.subf %336, %343 : vector<16x32xf32>
    %345 = arith.mulf %344, %344 : vector<16x32xf32>
    %cst_111 = arith.constant dense<0.000000e+00> : vector<16xf32>
    %346 = vector.multi_reduction <add>, %345, %cst_111 [1] : vector<16x32xf32> to vector<16xf32>
    %347 = vector.shape_cast %346 : vector<16xf32> to vector<16x1xf32>
    %cst_112 = arith.constant 3.200000e+01 : f32
    %348 = vector.broadcast %cst_112 : f32 to vector<16x1xf32>
    %349 = arith.divf %347, %348 : vector<16x1xf32>
    %cst_113 = arith.constant 9.99999996E-13 : f32
    %350 = vector.broadcast %cst_113 : f32 to vector<16x1xf32>
    %351 = arith.addf %349, %350 : vector<16x1xf32>
    %352 = math.rsqrt %351 : vector<16x1xf32>
    %353 = vector.broadcast %352 : vector<16x1xf32> to vector<16x32xf32>
    %354 = arith.mulf %344, %353 : vector<16x32xf32>
    %355 = vector.broadcast %337 : vector<1x32xf32> to vector<16x32xf32>
    %356 = arith.mulf %354, %355 : vector<16x32xf32>
    %357 = vector.broadcast %338 : vector<1x32xf32> to vector<16x32xf32>
    %358 = arith.addf %356, %357 : vector<16x32xf32>
    %359 = vector.shape_cast %358 : vector<16x32xf32> to vector<2x8x32xf32>
    %360 = vector.extract_strided_slice %359 {offsets = [0, 0, 0], sizes = [2, 1, 32], strides = [1, 1, 1]} : vector<2x8x32xf32> to vector<2x1x32xf32>
    %361 = vector.shape_cast %360 : vector<2x1x32xf32> to vector<2x32xf32>
    %c0_114 = arith.constant 0 : index
    %c0_115 = arith.constant 0 : index
    %362 = vector.load %arg8[%c0_114, %c0_115] : memref<32x32xbf16, #tpu.memory_space<vmem>>, vector<32x32xbf16>
    %363 = arith.truncf %361 : vector<2x32xf32> to vector<2x32xbf16>
    %cst_116 = arith.constant dense<0.000000e+00> : vector<2x32xf32>
    %364 = tpu.matmul %363, %362, %cst_116 {dimension_numbers = #tpu.dot_dimension_numbers<[1], [0], [0], [1], [0, 0, 1, 1], [], []>} : vector<2x32xbf16>, vector<32x32xbf16>, vector<2x32xf32> -> vector<2x32xf32>
    %365 = vector.extract_strided_slice %0 {offsets = [2, 0], sizes = [1, 32], strides = [1, 1]} : vector<8x128xf32> to vector<1x32xf32>
    %366 = vector.broadcast %365 : vector<1x32xf32> to vector<2x32xf32>
    %367 = arith.addf %364, %366 : vector<2x32xf32>
    %368 = math.tanh %367 : vector<2x32xf32>
    %c0_117 = arith.constant 0 : index
    %c0_118 = arith.constant 0 : index
    %369 = vector.load %arg9[%c0_117, %c0_118] : memref<2x32xf32, #tpu.memory_space<vmem>>, vector<2x32xf32>
    tpu.vector_store %arg9[%c0_117, %c0_118], %368 {strides = array<i32>} : memref<2x32xf32, #tpu.memory_space<vmem>>, vector<2x32xf32>,
    return
  }
}

</mosaic_0001>

<bundles_post_ra>
// kernel: bert_pooler_forward.1
= control target key start
LH: loop header
LB: loop body
LE: loop exit
PB: predicated region body
PF: predicated region fallthrough
CT: control target
= control target key end

     0   :  { %vm37_vm0 = vcmask 261120   ;;  %s2994_s0 = inlined_call_operand.vmem [shape: f32[16,32], index: 0, kind: input, shape index: {}]   ;;  %s2995_s1 = inlined_call_operand.vmem [shape: f32[16,16], index: 1, kind: input, shape index: {}]   ;;  %s2996_s2 = inlined_call_operand.vmem [shape: f32[8,128], index: 2, kind: input, shape index: {}]   ;;  %s2997_s3 = inlined_call_operand.vmem [shape: f32[2,8,128], index: 3, kind: input, shape index: {}]   ;;  %s2998_s4 = inlined_call_operand.vmem [shape: bf16[2,32,96], index: 4, kind: input, shape index: {}]   ;;  %s2999_s5 = inlined_call_operand.vmem [shape: bf16[2,32,32], index: 5, kind: input, shape index: {}]   ;;  %s3000_s6 = inlined_call_operand.vmem [shape: bf16[2,32,64], index: 6, kind: input, shape index: {}]   ;;  %s3001_s7 = inlined_call_operand.vmem [shape: bf16[2,64,32], index: 7, kind: input, shape index: {}]   ;;  %s3002_s8 = inlined_call_operand.vmem [shape: bf16[32,32], index: 8, kind: input, shape index: {}]   ;;  %s3003_s9 = inlined_call_operand.hbm [shape: f32[2,32], index: 9, kind: output, shape index: {}]  }
   0x1   :  { %v35_v0 = vld [vmem:[%s2994_s0] sm:$0xff]  ;;  %v36_v1 = vld [vmem:[%s2994_s0 + $0x8] sm:$0xff] }
   0x2   :  { %v38_v2 = vsel %vm37_vm0, %v35_v0, 0.0  ;;  %v41_v3 = vsel %vm37_vm0, %v36_v1, 0.0 }
   0x3   :  { %39 = vadd.xlane.f32.xlu0 %v38_v2 }
   0x7   :  { %42 = vadd.xlane.f32.xlu0 %v41_v3 }
   0x8   :  { %14 = vsyncpa [#allocation3], 0  ;;  %v2342_v14 = vld [vmem:[%s2998_s4] sm:$0xff]   ;;  %v2483_v15 = vmov 0.0   ;;  %v2343_v16 = vld [vmem:[%s2998_s4 + $0x8] sm:$0xff]   ;;  %vm2484_vm1 = vmmov 0   ;;  %v65_v21 = vlaneseq }
   0x9   :  { %2119 = vmatprep.subr.bf16.mxu0 %v2483_v15  ;;  %2127 = vmatprep.subr.bf16.mxu1 %v2483_v15  ;;  %v34_v26 = vld [vmem:[%s2996_s2] sm:$0xff]  ;;  %s2485_s20 = smov 88   ;;  %s2486_s21 = smov 96   ;;  %vm149_vm2 = vcmask 64512   ;;  %vm201_vm3 = vcmask 130048   ;;  %vm675_vm4 = vcmask 195584  }
   0xa   :  { %2120 = vmatpush3.bf16.msra.mxu0 %v2342_v14  ;;  %2123 = vmatprep.mubr.msk.bf16.mxu0 %vm2484_vm1, %v2483_v15  ;;  %v2574_v24 = vshrl.u32 %v65_v21, 7  ;;  %v2599_v39 = vld [vmem:[%s2997_s3] sm:$0xff]  ;;  %s2487_s22 = smov 120   ;;  %s2488_s23 = smov 112   ;;  %vm903_vm5 = vcmask 523264   ;;  %vm1913_vm6 = vcmask 1041409  }
   0xb   :  { %2121 = vmatprep.subr.bf16.mxu0 %v2483_v15  ;;  %2129 = vmatprep.mubr.msk.bf16.mxu1 %vm2484_vm1, %v2483_v15  ;;  %s2489_s24 = smov 80   ;;  %s2490_s25 = smov 104   ;;  %v2643_v60 = vld [vmem:[%s2995_s1] sm:$0xff]  ;;  %vm1972_vm7 = vcmask 254976  }
   0xc   :  { %v2577_v25 = vsub.s32 0, %v2574_v24  ;;  %v2584_v30 = vsub.s32 1, %v2574_v24  ;;  %s2491_s26 = smov 72   ;;  %s2493_s10 = smov 48  }
   0xd   :  { %s2494_s11 = smov 40   ;;  %s2495_s12 = smov 56  }
   0xe   :  { %2122 = vmatpush3.bf16.msra.mxu0 %v2343_v16  ;;  %v68_v29 = vrot.slane %v34_v26, %v2577_v25  ;;  %v74_v34 = vrot.slane %v34_v26, %v2584_v30  ;;  %v88_v40 = vrot.slane %v2599_v39, %v2577_v25  ;;  %s2496_s14 = smov 8   ;;  %s2497_s17 = smov 16  }
   0xf   :  { %2133 = vmatprep.subr.bf16.mxu0 %v2483_v15  ;;  %s2498_s18 = smov 24   ;;  %s2499_s28 = smov [#allocation2]  }
  0x10   :  { %s1980_s29 = sshll.u32 %s2499_s28, 4  ;;  %s1981_s29 = int_to_ptr.vmem [resolvable:$true] %s1980_s29 }
  0x11   :  { %s2459_s30 = scalar_lea.vmem %s1981_s29, 32  ;;  %p2464_p1 = scmp.lt.s32.totalorder %s1981_s29, %s1981_s29 }
  0x12   :  { %p2460_p0 = scmp.ne.s32.totalorder %s1981_s29, %s2459_s30  ;;  %p2465_p2 = scmp.lt.s32.totalorder %s2459_s30, %s2459_s30 }
  0x14   :  { %p2466_p3 = por %p2465_p2, %p2464_p1 }
  0x16   :  { %p2467_p4 = pnand %p2466_p3, %p2460_p0 }
  0x90   :  { %v40_v4 = vpop.xlane.xlu0 %39 }
  0x91   :  { %v45_v5 = vmul.f32 0.03125, %v40_v4 }
  0x93   :  { %v47_v6 = vsub.f32 %v35_v0, %v45_v5  ;;  %v2648_v0 = vld [vmem:[%s2995_s1 + $0x8] sm:$0xff]  ;;  %s2492_s1 = smov 64  }
  0x94   :  { %v43_v7 = vpop.xlane.xlu0 %42 }
  0x95   :  { %v46_v8 = vmul.f32 0.03125, %v43_v7  ;;  %v49_v9 = vmul.f32 %v47_v6, %v47_v6 }
  0x97   :  { %v48_v10 = vsub.f32 %v36_v1, %v46_v8  ;;  %v51_v11 = vsel %vm37_vm0, %v49_v9, 0.0 }
  0x98   :  { %52 = vadd.xlane.f32.xlu1 %v51_v11 }
  0x99   :  { %v50_v12 = vmul.f32 %v48_v10, %v48_v10 }
  0x9b   :  { %v54_v13 = vsel %vm37_vm0, %v50_v12, 0.0 }
  0x9c   :  { %55 = vadd.xlane.f32.xlu1 %v54_v13 }
 0x125   :  { %v53_v17 = vpop.xlane.xlu1 %52 }
 0x126   :  { %v57_v18 = vmul.f32 0.03125, %v53_v17 }
 0x128   :  { %v59_v19 = vadd.f32 1e-12, %v57_v18 }
 0x129   :  { %v56_v20 = vpop.xlane.xlu1 %55 }
 0x12a   :  { %2364 = vrsqrt.f32 %v59_v19  ;;  %v58_v22 = vmul.f32 0.03125, %v56_v20 }
 0x12c   :  { %v60_v23 = vadd.f32 1e-12, %v58_v22 }
 0x12e   :  { %2366 = vrsqrt.f32 %v60_v23 }
 0x134   :  { %v2365_v27 = vpop.eup %2364 }
 0x135   :  { %v63_v28 = vmul.f32 %v2365_v27, %v47_v6 }
 0x137   :  { %v69_v33 = vmul.f32 %v68_v29, %v63_v28 }
 0x138   :  { %v2367_v31 = vpop.eup %2366 }
 0x139   :  { %v64_v32 = vmul.f32 %v2367_v31, %v48_v10  ;;  %v2587_v36 = vadd.f32 %v74_v34, %v69_v33 }
 0x13b   :  { %v70_v35 = vmul.f32 %v68_v29, %v64_v32 }
 0x13d   :  { %v2589_v37 = vadd.f32 %v74_v34, %v70_v35 }
 0x13f   :  { %v84_v38 = vpack.c.bf16 %v2589_v37, %v2587_v36 }
 0x141   :  { %2124 = vmatmul.mubr.msk.bf16.vlgmr.msra.gmra.mrb[0].mxu0 %vm37_vm0, %v84_v38 }
 0x142   :  { %2135 = vmatprep.mubr.msk.bf16.mxu0 %vm2484_vm1, %v2483_v15 }
 0x214   :  { %v138_v41 = vpop.f32.mrb[0].mxu0 }
 0x215   :  { %v2125_v42 = vpop.f32.mrb[1].mxu0  ;;  %v139_v44 = vadd.f32 %v138_v41, %v88_v40 }
 0x216   :  { %v141_v43 = vpop.f32.mrb[2].mxu0 }
 0x217   :  { %v142_v45 = vadd.f32 %v141_v43, %v88_v40  ;;  %v2126_v46 = vpop.f32.mrb[3].mxu0 }
 0x219   :  { %v2603_v47 = vpack.c.bf16 %v142_v45, %v139_v44 }
 0x21b   :  { %274 = vrot.lane.b32.xlu1 %v2603_v47, %s2485_s20  ;;  %147 = vrot.lane.b32.xlu0 %v2603_v47, %s2486_s21 }
 0x21f   :  { %272 = vrot.lane.b32.xlu1 %v2603_v47, %s2487_s22  ;;  %397 = vrot.lane.b32.xlu0 %v2603_v47, %s2488_s23 }
 0x223   :  { %399 = vrot.lane.b32.xlu1 %v2603_v47, %s2489_s24  ;;  %522 = vrot.lane.b32.xlu0 %v2603_v47, %s2490_s25 }
 0x227   :  { %524 = vrot.lane.b32.xlu1 %v2603_v47, %s2491_s26 }
 0x28d   :  { %v148_v48 = vpop.permute.xlu0 %147  ;;  %v275_v50 = vpop.permute.xlu1 %274 }
 0x28e   :  { %v154_v49 = vsel %vm149_vm2, %v148_v48, 0  ;;  %v280_v52 = vsel %vm149_vm2, %v275_v50, 0 }
 0x28f   :  { %2128 = vmatpush3.bf16.xpose.msra.mxu1 %v154_v49 }
 0x290   :  { %2139 = vmatprep.subr.bf16.mxu1 %v2483_v15 }
 0x291   :  { %v273_v51 = vpop.permute.xlu1 %272  ;;  %v398_v56 = vpop.permute.xlu0 %397 }
 0x295   :  { %v400_v53 = vpop.permute.xlu1 %399  ;;  %v523_v58 = vpop.permute.xlu0 %522 }
 0x296   :  { %2130 = vmatmul.mubr.msk.bf16.vlgmr.msra.gmra.mrb[0].mxu1 %vm149_vm2, %v2603_v47  ;;  %v405_v54 = vsel %vm149_vm2, %v400_v53, 0 }
 0x297   :  { %2140 = vmatpush3.bf16.xpose.msra.mxu1 %v280_v52  ;;  %2141 = vmatprep.mubr.msk.bf16.mxu1 %vm2484_vm1, %v2483_v15 }
 0x298   :  { %2151 = vmatprep.subr.bf16.mxu1 %v2483_v15 }
 0x299   :  { %v525_v55 = vpop.permute.xlu1 %524 }
 0x29a   :  { %v530_v57 = vsel %vm149_vm2, %v525_v55, 0 }
 0x29e   :  { %2142 = vmatmul.mubr.msk.bf16.vlgmr.msra.gmra.mrb[4].mxu1 %vm149_vm2, %v273_v51 }
 0x29f   :  { %2152 = vmatpush3.bf16.xpose.msra.mxu1 %v405_v54  ;;  %2153 = vmatprep.mubr.msk.bf16.mxu1 %vm2484_vm1, %v2483_v15 }
 0x2a0   :  { %2163 = vmatprep.subr.bf16.mxu1 %v2483_v15 }
 0x2a6   :  { %2154 = vmatmul.mubr.msk.bf16.vlgmr.msra.gmra.mrb[8].mxu1 %vm149_vm2, %v398_v56 }
 0x2a7   :  { %2164 = vmatpush3.bf16.xpose.msra.mxu1 %v530_v57  ;;  %2165 = vmatprep.mubr.msk.bf16.mxu1 %vm2484_vm1, %v2483_v15 }
 0x2a8   :  { %2175 = vmatprep.subr.bf16.mxu1 %v2483_v15 }
 0x2ae   :  { %2166 = vmatmul.mubr.msk.bf16.vlgmr.msra.gmra.mrb[12].mxu1 %vm149_vm2, %v523_v58 }
 0x2af   :  { %2179 = vmatprep.mubr.msk.bf16.mxu1 %vm2484_vm1, %v2483_v15 }
 0x369   :  { %v190_v59 = vpop.f32.mrb[0].mxu1 }
 0x36a   :  { %v197_v61 = vmul.f32 0.35355338, %v190_v59  ;;  %v2131_v62 = vpop.f32.mrb[1].mxu1 }
 0x36b   :  { %v193_v63 = vpop.f32.mrb[2].mxu1 }
 0x36c   :  { %v198_v1 = vmul.f32 0.35355338, %v193_v63  ;;  %v2132_v2 = vpop.f32.mrb[3].mxu1  ;;  %v199_v3 = vadd.f32 %v197_v61, %v2643_v60 }
 0x36e   :  { %v202_v4 = vsel %vm201_vm3, %v199_v3, -inf  ;;  %v200_v5 = vadd.f32 %v198_v1, %v2648_v0 }
 0x36f   :  { %203 = vmax.xlane.f32.xlu1 %v202_v4 }
 0x370   :  { %v205_v6 = vsel %vm201_vm3, %v200_v5, -inf }
 0x371   :  { %206 = vmax.xlane.f32.xlu0 %v205_v6  ;;  %v316_v7 = vpop.f32.mrb[4].mxu1 }
 0x372   :  { %v323_v8 = vmul.f32 0.35355338, %v316_v7  ;;  %v2143_v9 = vpop.f32.mrb[5].mxu1 }
 0x373   :  { %v319_v10 = vpop.f32.mrb[6].mxu1 }
 0x374   :  { %v324_v11 = vmul.f32 0.35355338, %v319_v10  ;;  %v2144_v12 = vpop.f32.mrb[7].mxu1  ;;  %v325_v13 = vadd.f32 %v323_v8, %v2643_v60 }
 0x376   :  { %v327_v14 = vsel %vm201_vm3, %v325_v13, -inf  ;;  %v326_v16 = vadd.f32 %v324_v11, %v2648_v0 }
 0x377   :  { %328 = vmax.xlane.f32.xlu0 %v327_v14 }
 0x378   :  { %v330_v20 = vsel %vm201_vm3, %v326_v16, -inf }
 0x379   :  { %v441_v17 = vpop.f32.mrb[8].mxu1 }
 0x37a   :  { %v448_v18 = vmul.f32 0.35355338, %v441_v17  ;;  %v2155_v19 = vpop.f32.mrb[9].mxu1 }
 0x37b   :  { %331 = vmax.xlane.f32.xlu0 %v330_v20  ;;  %v444_v21 = vpop.f32.mrb[10].mxu1 }
 0x37c   :  { %v449_v22 = vmul.f32 0.35355338, %v444_v21  ;;  %v2156_v23 = vpop.f32.mrb[11].mxu1  ;;  %v450_v26 = vadd.f32 %v448_v18, %v2643_v60 }
 0x37e   :  { %v452_v27 = vsel %vm201_vm3, %v450_v26, -inf  ;;  %v451_v28 = vadd.f32 %v449_v22, %v2648_v0 }
 0x37f   :  { %453 = vmax.xlane.f32.xlu1 %v452_v27 }
 0x380   :  { %v455_v29 = vsel %vm201_vm3, %v451_v28, -inf }
 0x381   :  { %456 = vmax.xlane.f32.xlu0 %v455_v29  ;;  %v566_v31 = vpop.f32.mrb[12].mxu1 }
 0x382   :  { %v573_v32 = vmul.f32 0.35355338, %v566_v31  ;;  %v2167_v33 = vpop.f32.mrb[13].mxu1 }
 0x383   :  { %v569_v34 = vpop.f32.mrb[14].mxu1 }
 0x384   :  { %v574_v35 = vmul.f32 0.35355338, %v569_v34  ;;  %v2168_v38 = vpop.f32.mrb[15].mxu1  ;;  %v575_v40 = vadd.f32 %v573_v32, %v2643_v60 }
 0x386   :  { %v577_v41 = vsel %vm201_vm3, %v575_v40, -inf  ;;  %v576_v42 = vadd.f32 %v574_v35, %v2648_v0 }
 0x387   :  { %578 = vmax.xlane.f32.xlu1 %v577_v41 }
 0x388   :  { %v580_v43 = vsel %vm201_vm3, %v576_v42, -inf }
 0x389   :  { %581 = vmax.xlane.f32.xlu0 %v580_v43 }
 0x398   :  { %225 = vrot.lane.b32.xlu1 %v2603_v47, %s2492_s1 }
 0x3fc   :  { %v204_v44 = vpop.xlane.xlu1 %203 }
 0x3fd   :  { %v208_v45 = vsub.f32 %v199_v3, %v204_v44 }
 0x3fe   :  { %v207_v46 = vpop.xlane.xlu0 %206 }
 0x3ff   :  { %v210_v48 = vmul.f32 1.442695, %v208_v45  ;;  %v209_v49 = vsub.f32 %v200_v5, %v207_v46 }
 0x401   :  { %2368 = vpow2.f32 %v210_v48  ;;  %v212_v50 = vmul.f32 1.442695, %v209_v49 }
 0x403   :  { %2370 = vpow2.f32 %v212_v50 }
 0x404   :  { %v329_v51 = vpop.xlane.xlu0 %328 }
 0x405   :  { %v333_v52 = vsub.f32 %v325_v13, %v329_v51 }
 0x407   :  { %v335_v53 = vmul.f32 1.442695, %v333_v52 }
 0x408   :  { %v332_v54 = vpop.xlane.xlu0 %331 }
 0x409   :  { %2372 = vpow2.f32 %v335_v53  ;;  %v334_v55 = vsub.f32 %v326_v16, %v332_v54 }
 0x40b   :  { %v2369_v56 = vpop.eup %2368  ;;  %v337_v57 = vmul.f32 1.442695, %v334_v55 }
 0x40c   :  { %v454_v58 = vpop.xlane.xlu1 %453  ;;  %v214_v59 = vsel %vm201_vm3, %v2369_v56, 0.0 }
 0x40d   :  { %v2371_v61 = vpop.eup %2370  ;;  %2374 = vpow2.f32 %v337_v57  ;;  %v458_v62 = vsub.f32 %v450_v26, %v454_v58  ;;  %215 = vadd.xlane.f32.xlu1 %v214_v59 }
 0x40e   :  { %v457_v63 = vpop.xlane.xlu0 %456  ;;  %v217_v1 = vsel %vm201_vm3, %v2371_v61, 0.0 }
 0x40f   :  { %v460_v2 = vmul.f32 1.442695, %v458_v62  ;;  %v459_v3 = vsub.f32 %v451_v28, %v457_v63  ;;  %218 = vadd.xlane.f32.xlu0 %v217_v1 }
 0x411   :  { %2376 = vpow2.f32 %v460_v2  ;;  %v462_v4 = vmul.f32 1.442695, %v459_v3 }
 0x413   :  { %v2373_v5 = vpop.eup %2372  ;;  %2378 = vpow2.f32 %v462_v4 }
 0x414   :  { %v579_v6 = vpop.xlane.xlu1 %578  ;;  %v339_v7 = vsel %vm201_vm3, %v2373_v5, 0.0 }
 0x415   :  { %v583_v8 = vsub.f32 %v575_v40, %v579_v6  ;;  %340 = vadd.xlane.f32.xlu1 %v339_v7  ;;  %v2344_v7 = vld [vmem:[%s2999_s5] sm:$0xff]  }
 0x416   :  { %v582_v9 = vpop.xlane.xlu0 %581  ;;  %2176 = vmatpush3.bf16.msra.mxu1 %v2344_v7 }
 0x417   :  { %v2375_v10 = vpop.eup %2374  ;;  %v585_v11 = vmul.f32 1.442695, %v583_v8  ;;  %v584_v12 = vsub.f32 %v576_v42, %v582_v9  ;;  %2177 = vmatprep.subr.bf16.mxu1 %v2483_v15 }
 0x418   :  { %v226_v13 = vpop.permute.xlu1 %225  ;;  %v342_v14 = vsel %vm201_vm3, %v2375_v10, 0.0 }
 0x419   :  { %2380 = vpow2.f32 %v585_v11  ;;  %v587_v16 = vmul.f32 1.442695, %v584_v12  ;;  %2134 = vmatpush3.bf16.msra.mxu0 %v226_v13  ;;  %343 = vadd.xlane.f32.xlu0 %v342_v14  ;;  %v2345_v12 = vld [vmem:[%s2999_s5 + $0x8] sm:$0xff]  }
 0x41a   :  { %2145 = vmatprep.subr.bf16.mxu0 %v2483_v15  ;;  %2178 = vmatpush3.bf16.msra.mxu1 %v2345_v12 }
 0x41b   :  { %v2377_v17 = vpop.eup %2376  ;;  %2382 = vpow2.f32 %v587_v16  ;;  %2191 = vmatprep.subr.bf16.mxu1 %v2483_v15 }
 0x41c   :  { %v464_v18 = vsel %vm201_vm3, %v2377_v17, 0.0 }
 0x41d   :  { %v2379_v19 = vpop.eup %2378  ;;  %465 = vadd.xlane.f32.xlu1 %v464_v18 }
 0x41e   :  { %v467_v20 = vsel %vm201_vm3, %v2379_v19, 0.0 }
 0x41f   :  { %468 = vadd.xlane.f32.xlu0 %v467_v20 }
 0x423   :  { %v2381_v21 = vpop.eup %2380 }
 0x424   :  { %v589_v22 = vsel %vm201_vm3, %v2381_v21, 0.0 }
 0x425   :  { %v2383_v23 = vpop.eup %2382  ;;  %590 = vadd.xlane.f32.xlu1 %v589_v22 }
 0x426   :  { %v592_v26 = vsel %vm201_vm3, %v2383_v23, 0.0 }
 0x427   :  { %593 = vadd.xlane.f32.xlu0 %v592_v26 }
 0x436   :  { %475 = vrot.lane.b32.xlu1 %v2603_v47, %s2493_s10 }
 0x43a   :  { %600 = vrot.lane.b32.xlu1 %v2603_v47, %s2494_s11 }
 0x43d   :  { %350 = vrot.lane.b32.xlu0 %v2603_v47, %s2495_s12 }
 0x49a   :  { %v216_v27 = vpop.xlane.xlu1 %215 }
 0x49b   :  { %2384 = vrcp.f32 %v216_v27 }
 0x49c   :  { %v219_v28 = vpop.xlane.xlu0 %218 }
 0x49d   :  { %2386 = vrcp.f32 %v219_v28 }
 0x4a2   :  { %v341_v35 = vpop.xlane.xlu1 %340 }
 0x4a5   :  { %v2385_v29 = vpop.eup %2384 }
 0x4a6   :  { %v344_v31 = vpop.xlane.xlu0 %343  ;;  %v222_v33 = vmul.f32 %v2385_v29, %v2369_v56 }
 0x4a7   :  { %v2387_v32 = vpop.eup %2386  ;;  %2388 = vrcp.f32 %v344_v31 }
 0x4a8   :  { %v223_v34 = vmul.f32 %v2387_v32, %v2371_v61  ;;  %2390 = vrcp.f32 %v341_v35 }
 0x4aa   :  { %v224_v38 = vpack.c.bf16 %v223_v34, %v222_v33  ;;  %v466_v47 = vpop.xlane.xlu1 %465 }
 0x4ac   :  { %2136 = vmatmul.mubr.msk.bf16.vlgmr.msra.gmra.mrb[4].mxu0 %vm201_vm3, %v224_v38  ;;  %v469_v40 = vpop.xlane.xlu0 %468 }
 0x4ad   :  { %2147 = vmatprep.mubr.msk.bf16.mxu0 %vm2484_vm1, %v2483_v15  ;;  %2392 = vrcp.f32 %v469_v40 }
 0x4ae   :  { %2394 = vrcp.f32 %v466_v47 }
 0x4b1   :  { %v2389_v41 = vpop.eup %2388 }
 0x4b2   :  { %v2391_v43 = vpop.eup %2390  ;;  %v348_v44 = vmul.f32 %v2389_v41, %v2375_v10  ;;  %v591_v45 = vpop.xlane.xlu1 %590 }
 0x4b3   :  { %v347_v46 = vmul.f32 %v2391_v43, %v2373_v5  ;;  %v686_v43 = vrot.slane %v2599_v39, %v2584_v30 }
 0x4b4   :  { %v594_v42 = vpop.xlane.xlu0 %593 }
 0x4b5   :  { %2396 = vrcp.f32 %v594_v42  ;;  %v349_v49 = vpack.c.bf16 %v348_v44, %v347_v46 }
 0x4b6   :  { %2398 = vrcp.f32 %v591_v45  ;;  %v476_v51 = vpop.permute.xlu1 %475 }
 0x4b7   :  { %v2393_v50 = vpop.eup %2392 }
 0x4b8   :  { %v351_v48 = vpop.permute.xlu0 %350  ;;  %v2395_v52 = vpop.eup %2394  ;;  %v473_v53 = vmul.f32 %v2393_v50, %v2379_v19 }
 0x4b9   :  { %2146 = vmatpush3.bf16.msra.mxu0 %v351_v48  ;;  %v472_v54 = vmul.f32 %v2395_v52, %v2377_v17 }
 0x4ba   :  { %2157 = vmatprep.subr.bf16.mxu0 %v2483_v15  ;;  %v601_v57 = vpop.permute.xlu1 %600 }
 0x4bb   :  { %v474_v55 = vpack.c.bf16 %v473_v53, %v472_v54 }
 0x4bc   :  { %2148 = vmatmul.mubr.msk.bf16.vlgmr.msra.gmra.mrb[8].mxu0 %vm201_vm3, %v349_v49 }
 0x4bd   :  { %2158 = vmatpush3.bf16.msra.mxu0 %v476_v51  ;;  %2159 = vmatprep.mubr.msk.bf16.mxu0 %vm2484_vm1, %v2483_v15 }
 0x4be   :  { %2169 = vmatprep.subr.bf16.mxu0 %v2483_v15 }
 0x4bf   :  { %v2397_v56 = vpop.eup %2396 }
 0x4c0   :  { %v2399_v58 = vpop.eup %2398  ;;  %v598_v59 = vmul.f32 %v2397_v56, %v2383_v23 }
 0x4c1   :  { %v597_v61 = vmul.f32 %v2399_v58, %v2381_v21 }
 0x4c3   :  { %v599_v62 = vpack.c.bf16 %v598_v59, %v597_v61 }
 0x4c4   :  { %2160 = vmatmul.mubr.msk.bf16.vlgmr.msra.gmra.mrb[12].mxu0 %vm201_vm3, %v474_v55 }
 0x4c5   :  { %2170 = vmatpush3.bf16.msra.mxu0 %v601_v57  ;;  %2171 = vmatprep.mubr.msk.bf16.mxu0 %vm2484_vm1, %v2483_v15 }
 0x4c6   :  { %2183 = vmatprep.subr.bf16.mxu0 %v2483_v15 }
 0x4cc   :  { %2172 = vmatmul.mubr.msk.bf16.vlgmr.msra.gmra.mrb[16].mxu0 %vm201_vm3, %v599_v62 }
 0x4cd   :  { %2187 = vmatprep.mubr.msk.bf16.mxu0 %vm2484_vm1, %v2483_v15 }
 0x57f   :  { %v265_v63 = vpop.f32.mrb[4].mxu0 }
 0x580   :  { %v2137_v1 = vpop.f32.mrb[5].mxu0 }
 0x581   :  { %v268_v2 = vpop.f32.mrb[6].mxu0 }
 0x582   :  { %v2138_v3 = vpop.f32.mrb[7].mxu0 }
 0x58f   :  { %v390_v4 = vpop.f32.mrb[8].mxu0 }
 0x590   :  { %v2149_v5 = vpop.f32.mrb[9].mxu0 }
 0x591   :  { %v393_v6 = vpop.f32.mrb[10].mxu0 }
 0x592   :  { %v2312_v8 = vpack.i.bf16 %v393_v6, %v390_v4  ;;  %v2150_v9 = vpop.f32.mrb[11].mxu0 }
 0x593   :  { %v2735_v9 = vsub.s32 2, %v2574_v24 }
 0x594   :  { %2313 = vrot.lane.b32.xlu1 %v2312_v8, %s2496_s14 }
 0x597   :  { %v515_v10 = vpop.f32.mrb[12].mxu0 }
 0x598   :  { %v2161_v11 = vpop.f32.mrb[13].mxu0 }
 0x599   :  { %v518_v13 = vpop.f32.mrb[14].mxu0  ;;  %v774_v11 = vrot.slane %v2599_v39, %v2735_v9 }
 0x59a   :  { %v2317_v14 = vpack.i.bf16 %v518_v13, %v515_v10  ;;  %v2162_v16 = vpop.f32.mrb[15].mxu0  ;;  %v779_v13 = vsub.s32 3, %v2574_v24 }
 0x59c   :  { %2318 = vrot.lane.b32.xlu0 %v2317_v14, %s2497_s17 }
 0x59f   :  { %v640_v17 = vpop.f32.mrb[16].mxu0 }
 0x5a0   :  { %v2173_v18 = vpop.f32.mrb[17].mxu0 }
 0x5a1   :  { %v643_v19 = vpop.f32.mrb[18].mxu0  ;;  %v780_v18 = vrot.slane %v2599_v39, %v779_v13 }
 0x5a2   :  { %v2322_v20 = vpack.i.bf16 %v643_v19, %v640_v17  ;;  %v2174_v21 = vpop.f32.mrb[19].mxu0 }
 0x5a4   :  { %2323 = vrot.lane.b32.xlu1 %v2322_v20, %s2498_s18 }
 0x606   :  { %v2314_v22 = vpop.permute.xlu1 %2313 }
 0x607   :  { %v2316_v26 = vunpack.i.h.bf16 %v2314_v22  ;;  %v2315_v27 = vunpack.i.l.bf16 %v2314_v22 }
 0x609   :  { %v672_v32 = vsel %vm149_vm2, %v268_v2, %v2316_v26  ;;  %v671_v33 = vsel %vm149_vm2, %v265_v63, %v2315_v27  ;;  %v2347_v2 = vld [vmem:[%s3000_s6 + $0x8] sm:$0xff]   ;;  %v2350_v27 = vld [vmem:[%s3001_s7 + $0x10] sm:$0xff]  }
 0x60a   :  { %v2349_v26 = vld [vmem:[%s3001_s7 + $0x8] sm:$0xff]  }
 0x60e   :  { %v2319_v23 = vpop.permute.xlu0 %2318 }
 0x60f   :  { %v2321_v28 = vunpack.i.h.bf16 %v2319_v23  ;;  %v2320_v29 = vunpack.i.l.bf16 %v2319_v23  ;;  %v2348_v23 = vld [vmem:[%s3001_s7] sm:$0xff]  }
 0x611   :  { %v674_v38 = vsel %vm201_vm3, %v672_v32, %v2321_v28  ;;  %v673_v40 = vsel %vm201_vm3, %v671_v33, %v2320_v29  ;;  %v2351_v28 = vld [vmem:[%s3001_s7 + $0x18] sm:$0xff]   ;;  %v790_v29 = vsub.s32 4, %v2574_v24 }
 0x616   :  { %v2324_v31 = vpop.permute.xlu1 %2323 }
 0x617   :  { %v2326_v34 = vunpack.i.h.bf16 %v2324_v31  ;;  %v2325_v35 = vunpack.i.l.bf16 %v2324_v31  ;;  %v791_v31 = vrot.slane %v2599_v39, %v790_v29 }
 0x619   :  { %v677_v47 = vsel %vm675_vm4, %v674_v38, %v2326_v34  ;;  %v676_v41 = vsel %vm675_vm4, %v673_v40, %v2325_v35 }
 0x61a   :  { %v682_v42 = vpack.c.bf16 %v677_v47, %v676_v41 }
 0x61c   :  { %2180 = vmatmul.mubr.msk.bf16.vlgmr.msra.gmra.mrb[16].mxu1 %vm37_vm0, %v682_v42 }
 0x61d   :  { %2199 = vmatprep.mubr.msk.bf16.mxu1 %vm2484_vm1, %v2483_v15  ;;  %2192 = vmatpush3.bf16.msra.mxu1 %v2348_v23 }
 0x61e   :  { %2193 = vmatprep.subr.bf16.mxu1 %v2483_v15 }
 0x621   :  { %2194 = vmatpush3.bf16.msra.mxu1 %v2349_v26 }
 0x622   :  { %2195 = vmatprep.subr.bf16.mxu1 %v2483_v15 }
 0x625   :  { %2196 = vmatpush3.bf16.msra.mxu1 %v2350_v27 }
 0x626   :  { %2197 = vmatprep.subr.bf16.mxu1 %v2483_v15 }
 0x629   :  { %2198 = vmatpush3.bf16.msra.mxu1 %v2351_v28 }
 0x62a   :  { %2217 = vmatprep.subr.bf16.mxu1 %v2483_v15 }
 0x6ef   :  { %v736_v44 = vpop.f32.mrb[16].mxu1 }
 0x6f0   :  { %v737_v45 = vadd.f32 %v736_v44, %v686_v43  ;;  %v2181_v46 = vpop.f32.mrb[17].mxu1 }
 0x6f1   :  { %v739_v48 = vpop.f32.mrb[18].mxu1 }
 0x6f2   :  { %v740_v49 = vadd.f32 %v739_v48, %v686_v43  ;;  %v2182_v50 = vpop.f32.mrb[19].mxu1  ;;  %v743_v51 = vadd.f32 %v737_v45, %v2587_v36 }
 0x6f4   :  { %v745_v52 = vsel %vm37_vm0, %v743_v51, 0.0  ;;  %v744_v53 = vadd.f32 %v740_v49, %v2589_v37  ;;  %v2346_v37 = vld [vmem:[%s3000_s6] sm:$0xff]  }
 0x6f5   :  { %746 = vadd.xlane.f32.xlu0 %v745_v52  ;;  %2184 = vmatpush3.bf16.msra.mxu0 %v2346_v37 }
 0x6f6   :  { %v748_v54 = vsel %vm37_vm0, %v744_v53, 0.0  ;;  %2185 = vmatprep.subr.bf16.mxu0 %v2483_v15 }
 0x6f7   :  { %749 = vadd.xlane.f32.xlu1 %v748_v54 }
 0x6f9   :  { %2186 = vmatpush3.bf16.msra.mxu0 %v2347_v2 }
 0x6fa   :  { %2203 = vmatprep.subr.bf16.mxu0 %v2483_v15 }
 0x782   :  { %v747_v55 = vpop.xlane.xlu0 %746 }
 0x783   :  { %v751_v56 = vmul.f32 0.03125, %v747_v55 }
 0x784   :  { %v750_v57 = vpop.xlane.xlu1 %749 }
 0x785   :  { %v753_v58 = vsub.f32 %v743_v51, %v751_v56  ;;  %v752_v59 = vmul.f32 0.03125, %v750_v57 }
 0x787   :  { %v754_v61 = vsub.f32 %v744_v53, %v752_v59  ;;  %v755_v62 = vmul.f32 %v753_v58, %v753_v58 }
 0x789   :  { %v757_v63 = vsel %vm37_vm0, %v755_v62, 0.0  ;;  %v756_v1 = vmul.f32 %v754_v61, %v754_v61 }
 0x78a   :  { %758 = vadd.xlane.f32.xlu0 %v757_v63 }
 0x78b   :  { %v760_v36 = vsel %vm37_vm0, %v756_v1, 0.0 }
 0x78e   :  { %761 = vadd.xlane.f32.xlu0 %v760_v36 }
 0x817   :  { %v759_v3 = vpop.xlane.xlu0 %758 }
 0x818   :  { %v763_v4 = vmul.f32 0.03125, %v759_v3 }
 0x81a   :  { %v765_v5 = vadd.f32 1e-12, %v763_v4 }
 0x81b   :  { %v762_v6 = vpop.xlane.xlu0 %761 }
 0x81c   :  { %2400 = vrsqrt.f32 %v765_v5  ;;  %v764_v7 = vmul.f32 0.03125, %v762_v6 }
 0x81e   :  { %v766_v8 = vadd.f32 1e-12, %v764_v7 }
 0x820   :  { %2402 = vrsqrt.f32 %v766_v8 }
 0x826   :  { %v2401_v10 = vpop.eup %2400 }
 0x827   :  { %v769_v12 = vmul.f32 %v2401_v10, %v753_v58 }
 0x829   :  { %v775_v16 = vmul.f32 %v774_v11, %v769_v12 }
 0x82a   :  { %v2403_v14 = vpop.eup %2402 }
 0x82b   :  { %v770_v17 = vmul.f32 %v2403_v14, %v754_v61  ;;  %v781_v20 = vadd.f32 %v780_v18, %v775_v16  ;;  %v877_v61 = vsub.s32 5, %v2574_v24 }
 0x82d   :  { %v776_v19 = vmul.f32 %v774_v11, %v770_v17  ;;  %v878_v62 = vrot.slane %v2599_v39, %v877_v61 }
 0x82f   :  { %v782_v21 = vadd.f32 %v780_v18, %v776_v19 }
 0x831   :  { %v787_v22 = vpack.c.bf16 %v782_v21, %v781_v20 }
 0x833   :  { %2188 = vmatmul.mubr.msk.bf16.vlgmr.msra.gmra.mrb[20].mxu0 %vm37_vm0, %v787_v22  ;;  %v2353_v22 = vld [vmem:[%s2998_s4 + $0x18] sm:$0xff]  }
 0x834   :  { %2207 = vmatprep.mubr.msk.bf16.mxu0 %vm2484_vm1, %v2483_v15 }
 0x906   :  { %v841_v32 = vpop.f32.mrb[20].mxu0 }
 0x907   :  { %v842_v33 = vadd.f32 %v841_v32, %v791_v31  ;;  %v2189_v34 = vpop.f32.mrb[21].mxu0 }
 0x908   :  { %v844_v35 = vpop.f32.mrb[22].mxu0 }
 0x909   :  { %v850_v38 = vmul.f32 0.044715, %v842_v33  ;;  %v845_v40 = vadd.f32 %v844_v35, %v791_v31  ;;  %v2190_v47 = vpop.f32.mrb[23].mxu0  ;;  %v848_v54 = vmul.f32 0.5, %v842_v33  ;;  %v984_v35 = vsub.s32 7, %v2574_v24 }
 0x90b   :  { %v852_v41 = vmul.f32 %v850_v38, %v842_v33  ;;  %v851_v42 = vmul.f32 0.044715, %v845_v40  ;;  %v849_v55 = vmul.f32 0.5, %v845_v40 }
 0x90d   :  { %v854_v43 = vmul.f32 %v852_v41, %v842_v33  ;;  %v853_v44 = vmul.f32 %v851_v42, %v845_v40 }
 0x90f   :  { %v856_v45 = vadd.f32 %v854_v43, %v842_v33  ;;  %v855_v46 = vmul.f32 %v853_v44, %v845_v40  ;;  %v978_v33 = vsub.s32 6, %v2574_v24  ;;  %v985_v43 = vrot.slane %v2599_v39, %v984_v35  ;;  %v2458_v24 = vld [vmem:[%s2996_s2] sm:$0xff] }
 0x911   :  { %v858_v48 = vmul.f32 0.7978846, %v856_v45  ;;  %v857_v49 = vadd.f32 %v855_v46, %v845_v40  ;;  %v979_v34 = vrot.slane %v2599_v39, %v978_v33 }
 0x913   :  { %2404 = vtanh.f32 %v858_v48  ;;  %v859_v50 = vmul.f32 0.7978846, %v857_v49  ;;  %v2805_v49 = vld [vmem:[%s2997_s3 + $0x8] sm:$0xff] }
 0x914   :  { %v999_v39 = vrot.slane %v2805_v49, %v2577_v25 }
 0x915   :  { %2406 = vtanh.f32 %v859_v50 }
 0x91d   :  { %v2405_v51 = vpop.eup %2404 }
 0x91e   :  { %v862_v52 = vadd.f32 1.0, %v2405_v51 }
 0x91f   :  { %v2407_v53 = vpop.eup %2406 }
 0x920   :  { %v863_v56 = vadd.f32 1.0, %v2407_v53  ;;  %v864_v57 = vmul.f32 %v862_v52, %v848_v54 }
 0x922   :  { %v865_v58 = vmul.f32 %v863_v56, %v849_v55 }
 0x924   :  { %v874_v59 = vpack.c.bf16 %v865_v58, %v864_v57 }
 0x926   :  { %2200 = vmatmul.mubr.msk.bf16.vlgmr.msra.gmra.mrb[20].mxu1 %vm903_vm5, %v874_v59 }
 0x927   :  { %2219 = vmatprep.mubr.msk.bf16.mxu1 %vm2484_vm1, %v2483_v15 }
 0x9f9   :  { %v941_v63 = vpop.f32.mrb[20].mxu1 }
 0x9fa   :  { %v942_v1 = vadd.f32 %v941_v63, %v878_v62  ;;  %v2201_v36 = vpop.f32.mrb[21].mxu1 }
 0x9fb   :  { %v944_v37 = vpop.f32.mrb[22].mxu1 }
 0x9fc   :  { %v945_v2 = vadd.f32 %v944_v37, %v878_v62  ;;  %v2202_v3 = vpop.f32.mrb[23].mxu1  ;;  %v948_v4 = vadd.f32 %v942_v1, %v781_v20 }
 0x9fe   :  { %v950_v5 = vsel %vm37_vm0, %v948_v4, 0.0  ;;  %v949_v6 = vadd.f32 %v945_v2, %v782_v21  ;;  %v2352_v21 = vld [vmem:[%s2998_s4 + $0x10] sm:$0xff]  }
 0x9ff   :  { %951 = vadd.xlane.f32.xlu0 %v950_v5  ;;  %2204 = vmatpush3.bf16.msra.mxu0 %v2352_v21 }
 0xa00   :  { %v953_v7 = vsel %vm37_vm0, %v949_v6, 0.0  ;;  %2205 = vmatprep.subr.bf16.mxu0 %v2483_v15 }
 0xa01   :  { %954 = vadd.xlane.f32.xlu1 %v953_v7 }
 0xa03   :  { %2206 = vmatpush3.bf16.msra.mxu0 %v2353_v22 }
 0xa04   :  { %2211 = vmatprep.subr.bf16.mxu0 %v2483_v15 }
 0xa8c   :  { %v952_v8 = vpop.xlane.xlu0 %951 }
 0xa8d   :  { %v956_v10 = vmul.f32 0.03125, %v952_v8 }
 0xa8e   :  { %v955_v11 = vpop.xlane.xlu1 %954 }
 0xa8f   :  { %v958_v12 = vsub.f32 %v948_v4, %v956_v10  ;;  %v957_v14 = vmul.f32 0.03125, %v955_v11 }
 0xa91   :  { %v959_v16 = vsub.f32 %v949_v6, %v957_v14  ;;  %v960_v17 = vmul.f32 %v958_v12, %v958_v12 }
 0xa93   :  { %v962_v18 = vsel %vm37_vm0, %v960_v17, 0.0  ;;  %v961_v19 = vmul.f32 %v959_v16, %v959_v16 }
 0xa94   :  { %963 = vadd.xlane.f32.xlu0 %v962_v18 }
 0xa95   :  { %v965_v20 = vsel %vm37_vm0, %v961_v19, 0.0 }
 0xa96   :  { %966 = vadd.xlane.f32.xlu1 %v965_v20 }
 0xb21   :  { %v964_v23 = vpop.xlane.xlu0 %963 }
 0xb22   :  { %v968_v26 = vmul.f32 0.03125, %v964_v23 }
 0xb23   :  { %v967_v27 = vpop.xlane.xlu1 %966 }
 0xb24   :  { %v970_v28 = vadd.f32 1e-12, %v968_v26  ;;  %v969_v31 = vmul.f32 0.03125, %v967_v27 }
 0xb26   :  { %2408 = vrsqrt.f32 %v970_v28  ;;  %v971_v32 = vadd.f32 1e-12, %v969_v31 }
 0xb28   :  { %2410 = vrsqrt.f32 %v971_v32 }
 0xb30   :  { %v2409_v38 = vpop.eup %2408 }
 0xb31   :  { %v974_v40 = vmul.f32 %v2409_v38, %v958_v12 }
 0xb32   :  { %v2411_v47 = vpop.eup %2410 }
 0xb33   :  { %v980_v41 = vmul.f32 %v979_v34, %v974_v40  ;;  %v975_v42 = vmul.f32 %v2411_v47, %v959_v16 }
 0xb35   :  { %v981_v44 = vmul.f32 %v979_v34, %v975_v42  ;;  %v2793_v45 = vadd.f32 %v985_v43, %v980_v41 }
 0xb37   :  { %v2795_v46 = vadd.f32 %v985_v43, %v981_v44 }
 0xb39   :  { %v995_v48 = vpack.c.bf16 %v2795_v46, %v2793_v45 }
 0xb3b   :  { %2208 = vmatmul.mubr.msk.bf16.vlgmr.msra.gmra.mrb[24].mxu0 %vm37_vm0, %v995_v48 }
 0xb3c   :  { %2213 = vmatprep.mubr.msk.bf16.mxu0 %vm2484_vm1, %v2483_v15 }
 0xc0e   :  { %v1049_v50 = vpop.f32.mrb[24].mxu0 }
 0xc0f   :  { %v2209_v51 = vpop.f32.mrb[25].mxu0  ;;  %v1050_v53 = vadd.f32 %v1049_v50, %v999_v39 }
 0xc10   :  { %v1052_v52 = vpop.f32.mrb[26].mxu0 }
 0xc11   :  { %v1053_v54 = vadd.f32 %v1052_v52, %v999_v39  ;;  %v2210_v55 = vpop.f32.mrb[27].mxu0 }
 0xc13   :  { %v2809_v56 = vpack.c.bf16 %v1053_v54, %v1050_v53 }
 0xc15   :  { %1183 = vrot.lane.b32.xlu1 %v2809_v56, %s2485_s20  ;;  %1058 = vrot.lane.b32.xlu0 %v2809_v56, %s2486_s21 }
 0xc19   :  { %1181 = vrot.lane.b32.xlu1 %v2809_v56, %s2487_s22  ;;  %1306 = vrot.lane.b32.xlu0 %v2809_v56, %s2488_s23 }
 0xc1d   :  { %1308 = vrot.lane.b32.xlu1 %v2809_v56, %s2489_s24  ;;  %1431 = vrot.lane.b32.xlu0 %v2809_v56, %s2490_s25 }
 0xc21   :  { %1433 = vrot.lane.b32.xlu1 %v2809_v56, %s2491_s26 }
 0xc87   :  { %v1059_v25 = vpop.permute.xlu0 %1058  ;;  %v1184_v58 = vpop.permute.xlu1 %1183 }
 0xc88   :  { %v1064_v57 = vsel %vm149_vm2, %v1059_v25, 0  ;;  %v1189_v62 = vsel %vm149_vm2, %v1184_v58, 0 }
 0xc89   :  { %2212 = vmatpush3.bf16.xpose.msra.mxu0 %v1064_v57 }
 0xc8a   :  { %2223 = vmatprep.subr.bf16.mxu0 %v2483_v15 }
 0xc8b   :  { %v1182_v59 = vpop.permute.xlu1 %1181  ;;  %v1307_v37 = vpop.permute.xlu0 %1306 }
 0xc8f   :  { %v1309_v63 = vpop.permute.xlu1 %1308  ;;  %v1432_v3 = vpop.permute.xlu0 %1431 }
 0xc90   :  { %2214 = vmatmul.mubr.msk.bf16.vlgmr.msra.gmra.mrb[28].mxu0 %vm149_vm2, %v2809_v56  ;;  %v1314_v1 = vsel %vm149_vm2, %v1309_v63, 0 }
 0xc91   :  { %2224 = vmatpush3.bf16.xpose.msra.mxu0 %v1189_v62  ;;  %2225 = vmatprep.mubr.msk.bf16.mxu0 %vm2484_vm1, %v2483_v15 }
 0xc92   :  { %2235 = vmatprep.subr.bf16.mxu0 %v2483_v15 }
 0xc93   :  { %v1434_v36 = vpop.permute.xlu1 %1433 }
 0xc94   :  { %v1439_v2 = vsel %vm149_vm2, %v1434_v36, 0 }
 0xc98   :  { %2226 = vmatmul.mubr.msk.bf16.vlgmr.msra.gmra.mrb[32].mxu0 %vm149_vm2, %v1182_v59 }
 0xc99   :  { %2236 = vmatpush3.bf16.xpose.msra.mxu0 %v1314_v1  ;;  %2237 = vmatprep.mubr.msk.bf16.mxu0 %vm2484_vm1, %v2483_v15 }
 0xc9a   :  { %2247 = vmatprep.subr.bf16.mxu0 %v2483_v15 }
 0xca0   :  { %2238 = vmatmul.mubr.msk.bf16.vlgmr.msra.gmra.mrb[36].mxu0 %vm149_vm2, %v1307_v37 }
 0xca1   :  { %2248 = vmatpush3.bf16.xpose.msra.mxu0 %v1439_v2  ;;  %2249 = vmatprep.mubr.msk.bf16.mxu0 %vm2484_vm1, %v2483_v15 }
 0xca2   :  { %2259 = vmatprep.subr.bf16.mxu0 %v2483_v15 }
 0xca8   :  { %2250 = vmatmul.mubr.msk.bf16.vlgmr.msra.gmra.mrb[40].mxu0 %vm149_vm2, %v1432_v3 }
 0xca9   :  { %2263 = vmatprep.mubr.msk.bf16.mxu0 %vm2484_vm1, %v2483_v15 }
 0xd63   :  { %v1100_v4 = vpop.f32.mrb[28].mxu0 }
 0xd64   :  { %v1107_v5 = vmul.f32 0.35355338, %v1100_v4  ;;  %v2215_v6 = vpop.f32.mrb[29].mxu0 }
 0xd65   :  { %v1103_v7 = vpop.f32.mrb[30].mxu0 }
 0xd66   :  { %v1108_v8 = vmul.f32 0.35355338, %v1103_v7  ;;  %v2216_v10 = vpop.f32.mrb[31].mxu0  ;;  %v1109_v11 = vadd.f32 %v1107_v5, %v2643_v60 }
 0xd68   :  { %v1111_v12 = vsel %vm201_vm3, %v1109_v11, -inf  ;;  %v1110_v14 = vadd.f32 %v1108_v8, %v2648_v0 }
 0xd69   :  { %1112 = vmax.xlane.f32.xlu1 %v1111_v12 }
 0xd6a   :  { %v1114_v16 = vsel %vm201_vm3, %v1110_v14, -inf }
 0xd6b   :  { %1115 = vmax.xlane.f32.xlu0 %v1114_v16  ;;  %v1225_v17 = vpop.f32.mrb[32].mxu0 }
 0xd6c   :  { %v1232_v18 = vmul.f32 0.35355338, %v1225_v17  ;;  %v2227_v19 = vpop.f32.mrb[33].mxu0 }
 0xd6d   :  { %v1228_v20 = vpop.f32.mrb[34].mxu0 }
 0xd6e   :  { %v1233_v21 = vmul.f32 0.35355338, %v1228_v20  ;;  %v2228_v22 = vpop.f32.mrb[35].mxu0  ;;  %v1234_v23 = vadd.f32 %v1232_v18, %v2643_v60 }
 0xd70   :  { %v1236_v26 = vsel %vm201_vm3, %v1234_v23, -inf  ;;  %v1235_v27 = vadd.f32 %v1233_v21, %v2648_v0 }
 0xd71   :  { %1237 = vmax.xlane.f32.xlu0 %v1236_v26 }
 0xd72   :  { %v1239_v34 = vsel %vm201_vm3, %v1235_v27, -inf }
 0xd73   :  { %v1350_v28 = vpop.f32.mrb[36].mxu0 }
 0xd74   :  { %v1357_v31 = vmul.f32 0.35355338, %v1350_v28  ;;  %v2239_v32 = vpop.f32.mrb[37].mxu0 }
 0xd75   :  { %1240 = vmax.xlane.f32.xlu0 %v1239_v34  ;;  %v1353_v38 = vpop.f32.mrb[38].mxu0 }
 0xd76   :  { %v1358_v40 = vmul.f32 0.35355338, %v1353_v38  ;;  %v2240_v47 = vpop.f32.mrb[39].mxu0  ;;  %v1359_v41 = vadd.f32 %v1357_v31, %v2643_v60 }
 0xd78   :  { %v1361_v42 = vsel %vm201_vm3, %v1359_v41, -inf  ;;  %v1360_v43 = vadd.f32 %v1358_v40, %v2648_v0 }
 0xd79   :  { %1362 = vmax.xlane.f32.xlu1 %v1361_v42 }
 0xd7a   :  { %v1364_v44 = vsel %vm201_vm3, %v1360_v43, -inf }
 0xd7b   :  { %1365 = vmax.xlane.f32.xlu0 %v1364_v44  ;;  %v1475_v48 = vpop.f32.mrb[40].mxu0 }
 0xd7c   :  { %v1482_v39 = vmul.f32 0.35355338, %v1475_v48  ;;  %v2251_v50 = vpop.f32.mrb[41].mxu0 }
 0xd7d   :  { %v1478_v51 = vpop.f32.mrb[42].mxu0 }
 0xd7e   :  { %v1483_v52 = vmul.f32 0.35355338, %v1478_v51  ;;  %v2252_v53 = vpop.f32.mrb[43].mxu0  ;;  %v1484_v54 = vadd.f32 %v1482_v39, %v2643_v60 }
 0xd80   :  { %v1486_v55 = vsel %vm201_vm3, %v1484_v54, -inf  ;;  %v1485_v25 = vadd.f32 %v1483_v52, %v2648_v0 }
 0xd81   :  { %1487 = vmax.xlane.f32.xlu1 %v1486_v55 }
 0xd82   :  { %v1489_v57 = vsel %vm201_vm3, %v1485_v25, -inf }
 0xd83   :  { %1490 = vmax.xlane.f32.xlu0 %v1489_v57 }
 0xd92   :  { %1134 = vrot.lane.b32.xlu1 %v2809_v56, %s2492_s1 }
 0xdf6   :  { %v1113_v58 = vpop.xlane.xlu1 %1112 }
 0xdf7   :  { %v1117_v59 = vsub.f32 %v1109_v11, %v1113_v58 }
 0xdf8   :  { %v1116_v62 = vpop.xlane.xlu0 %1115 }
 0xdf9   :  { %v1119_v63 = vmul.f32 1.442695, %v1117_v59  ;;  %v1118_v1 = vsub.f32 %v1110_v14, %v1116_v62 }
 0xdfb   :  { %2412 = vpow2.f32 %v1119_v63  ;;  %v1121_v36 = vmul.f32 1.442695, %v1118_v1 }
 0xdfd   :  { %2414 = vpow2.f32 %v1121_v36 }
 0xdfe   :  { %v1238_v60 = vpop.xlane.xlu0 %1237 }
 0xdff   :  { %v1242_v37 = vsub.f32 %v1234_v23, %v1238_v60 }
 0xe01   :  { %v1244_v2 = vmul.f32 1.442695, %v1242_v37 }
 0xe02   :  { %v1241_v3 = vpop.xlane.xlu0 %1240 }
 0xe03   :  { %2416 = vpow2.f32 %v1244_v2  ;;  %v1243_v0 = vsub.f32 %v1235_v27, %v1241_v3 }
 0xe05   :  { %v2413_v4 = vpop.eup %2412  ;;  %v1246_v5 = vmul.f32 1.442695, %v1243_v0 }
 0xe06   :  { %v1363_v6 = vpop.xlane.xlu1 %1362  ;;  %v1123_v7 = vsel %vm201_vm3, %v2413_v4, 0.0 }
 0xe07   :  { %v2415_v8 = vpop.eup %2414  ;;  %2418 = vpow2.f32 %v1246_v5  ;;  %v1367_v10 = vsub.f32 %v1359_v41, %v1363_v6  ;;  %1124 = vadd.xlane.f32.xlu1 %v1123_v7 }
 0xe08   :  { %v1366_v11 = vpop.xlane.xlu0 %1365  ;;  %v1126_v12 = vsel %vm201_vm3, %v2415_v8, 0.0 }
 0xe09   :  { %v1369_v14 = vmul.f32 1.442695, %v1367_v10  ;;  %v1368_v16 = vsub.f32 %v1360_v43, %v1366_v11  ;;  %1127 = vadd.xlane.f32.xlu0 %v1126_v12 }
 0xe0b   :  { %2420 = vpow2.f32 %v1369_v14  ;;  %v1371_v17 = vmul.f32 1.442695, %v1368_v16 }
 0xe0d   :  { %v2417_v18 = vpop.eup %2416  ;;  %2422 = vpow2.f32 %v1371_v17 }
 0xe0e   :  { %v1488_v19 = vpop.xlane.xlu1 %1487  ;;  %v1248_v20 = vsel %vm201_vm3, %v2417_v18, 0.0 }
 0xe0f   :  { %v1492_v21 = vsub.f32 %v1484_v54, %v1488_v19  ;;  %1249 = vadd.xlane.f32.xlu1 %v1248_v20 }
 0xe10   :  { %v1491_v22 = vpop.xlane.xlu0 %1490 }
 0xe11   :  { %v2419_v23 = vpop.eup %2418  ;;  %v1494_v26 = vmul.f32 1.442695, %v1492_v21  ;;  %v1493_v27 = vsub.f32 %v1485_v25, %v1491_v22 }
 0xe12   :  { %v1135_v28 = vpop.permute.xlu1 %1134  ;;  %v1251_v31 = vsel %vm201_vm3, %v2419_v23, 0.0 }
 0xe13   :  { %2424 = vpow2.f32 %v1494_v26  ;;  %v1496_v32 = vmul.f32 1.442695, %v1493_v27  ;;  %2218 = vmatpush3.bf16.msra.mxu1 %v1135_v28  ;;  %1252 = vadd.xlane.f32.xlu0 %v1251_v31 }
 0xe14   :  { %2229 = vmatprep.subr.bf16.mxu1 %v2483_v15 }
 0xe15   :  { %v2421_v34 = vpop.eup %2420  ;;  %2426 = vpow2.f32 %v1496_v32  ;;  %v2355_v32 = vld [vmem:[%s2999_s5 + $0x18] sm:$0xff]  }
 0xe16   :  { %v1373_v38 = vsel %vm201_vm3, %v2421_v34, 0.0 }
 0xe17   :  { %v2423_v40 = vpop.eup %2422  ;;  %1374 = vadd.xlane.f32.xlu1 %v1373_v38 }
 0xe18   :  { %v1376_v47 = vsel %vm201_vm3, %v2423_v40, 0.0 }
 0xe19   :  { %1377 = vadd.xlane.f32.xlu0 %v1376_v47 }
 0xe1d   :  { %v2425_v41 = vpop.eup %2424 }
 0xe1e   :  { %v1498_v42 = vsel %vm201_vm3, %v2425_v41, 0.0 }
 0xe1f   :  { %v2427_v43 = vpop.eup %2426  ;;  %1499 = vadd.xlane.f32.xlu1 %v1498_v42 }
 0xe20   :  { %v1501_v44 = vsel %vm201_vm3, %v2427_v43, 0.0 }
 0xe21   :  { %1502 = vadd.xlane.f32.xlu0 %v1501_v44 }
 0xe30   :  { %1384 = vrot.lane.b32.xlu1 %v2809_v56, %s2493_s10 }
 0xe34   :  { %1509 = vrot.lane.b32.xlu1 %v2809_v56, %s2494_s11 }
 0xe37   :  { %1259 = vrot.lane.b32.xlu0 %v2809_v56, %s2495_s12 }
 0xe94   :  { %v1125_v48 = vpop.xlane.xlu1 %1124 }
 0xe95   :  { %2428 = vrcp.f32 %v1125_v48 }
 0xe96   :  { %v1128_v39 = vpop.xlane.xlu0 %1127 }
 0xe97   :  { %2430 = vrcp.f32 %v1128_v39 }
 0xe9c   :  { %v1250_v55 = vpop.xlane.xlu1 %1249 }
 0xe9f   :  { %v2429_v50 = vpop.eup %2428 }
 0xea0   :  { %v1253_v51 = vpop.xlane.xlu0 %1252  ;;  %v1131_v53 = vmul.f32 %v2429_v50, %v2413_v4 }
 0xea1   :  { %v2431_v52 = vpop.eup %2430  ;;  %2432 = vrcp.f32 %v1253_v51 }
 0xea2   :  { %v1132_v54 = vmul.f32 %v2431_v52, %v2415_v8  ;;  %2434 = vrcp.f32 %v1250_v55 }
 0xea4   :  { %v1133_v25 = vpack.c.bf16 %v1132_v54, %v1131_v53  ;;  %v1375_v56 = vpop.xlane.xlu1 %1374 }
 0xea6   :  { %2220 = vmatmul.mubr.msk.bf16.vlgmr.msra.gmra.mrb[24].mxu1 %vm201_vm3, %v1133_v25  ;;  %v1378_v57 = vpop.xlane.xlu0 %1377 }
 0xea7   :  { %2231 = vmatprep.mubr.msk.bf16.mxu1 %vm2484_vm1, %v2483_v15  ;;  %2436 = vrcp.f32 %v1378_v57 }
 0xea8   :  { %2438 = vrcp.f32 %v1375_v56 }
 0xeab   :  { %v2433_v58 = vpop.eup %2432 }
 0xeac   :  { %v2435_v62 = vpop.eup %2434  ;;  %v1257_v63 = vmul.f32 %v2433_v58, %v2419_v23  ;;  %v1500_v1 = vpop.xlane.xlu1 %1499  ;;  %v2354_v23 = vld [vmem:[%s2999_s5 + $0x10] sm:$0xff]  }
 0xead   :  { %v1256_v36 = vmul.f32 %v2435_v62, %v2417_v18  ;;  %2260 = vmatpush3.bf16.msra.mxu0 %v2354_v23 }
 0xeae   :  { %v1503_v59 = vpop.xlane.xlu0 %1502  ;;  %2261 = vmatprep.subr.bf16.mxu0 %v2483_v15 }
 0xeaf   :  { %2440 = vrcp.f32 %v1503_v59  ;;  %v1258_v37 = vpack.c.bf16 %v1257_v63, %v1256_v36  ;;  %v1595_v36 = vrot.slane %v2805_v49, %v2584_v30 }
 0xeb0   :  { %2442 = vrcp.f32 %v1500_v1  ;;  %v1385_v3 = vpop.permute.xlu1 %1384 }
 0xeb1   :  { %v2437_v2 = vpop.eup %2436  ;;  %2262 = vmatpush3.bf16.msra.mxu0 %v2355_v32  ;;  %v1683_v32 = vrot.slane %v2805_v49, %v2735_v9 }
 0xeb2   :  { %v1260_v60 = vpop.permute.xlu0 %1259  ;;  %v2439_v0 = vpop.eup %2438  ;;  %v1382_v4 = vmul.f32 %v2437_v2, %v2423_v40  ;;  %2275 = vmatprep.subr.bf16.mxu0 %v2483_v15 }
 0xeb3   :  { %2230 = vmatpush3.bf16.msra.mxu1 %v1260_v60  ;;  %v1381_v5 = vmul.f32 %v2439_v0, %v2421_v34 }
 0xeb4   :  { %2241 = vmatprep.subr.bf16.mxu1 %v2483_v15  ;;  %v1510_v8 = vpop.permute.xlu1 %1509 }
 0xeb5   :  { %v1383_v6 = vpack.c.bf16 %v1382_v4, %v1381_v5 }
 0xeb6   :  { %2232 = vmatmul.mubr.msk.bf16.vlgmr.msra.gmra.mrb[28].mxu1 %vm201_vm3, %v1258_v37 }
 0xeb7   :  { %2242 = vmatpush3.bf16.msra.mxu1 %v1385_v3  ;;  %2243 = vmatprep.mubr.msk.bf16.mxu1 %vm2484_vm1, %v2483_v15 }
 0xeb8   :  { %2253 = vmatprep.subr.bf16.mxu1 %v2483_v15 }
 0xeb9   :  { %v2441_v7 = vpop.eup %2440 }
 0xeba   :  { %v2443_v10 = vpop.eup %2442  ;;  %v1507_v11 = vmul.f32 %v2441_v7, %v2427_v43 }
 0xebb   :  { %v1506_v12 = vmul.f32 %v2443_v10, %v2425_v41 }
 0xebd   :  { %v1508_v14 = vpack.c.bf16 %v1507_v11, %v1506_v12 }
 0xebe   :  { %2244 = vmatmul.mubr.msk.bf16.vlgmr.msra.gmra.mrb[32].mxu1 %vm201_vm3, %v1383_v6 }
 0xebf   :  { %2254 = vmatpush3.bf16.msra.mxu1 %v1510_v8  ;;  %2255 = vmatprep.mubr.msk.bf16.mxu1 %vm2484_vm1, %v2483_v15 }
 0xec0   :  { %2267 = vmatprep.subr.bf16.mxu1 %v2483_v15 }
 0xec6   :  { %2256 = vmatmul.mubr.msk.bf16.vlgmr.msra.gmra.mrb[36].mxu1 %vm201_vm3, %v1508_v14 }
 0xec7   :  { %2271 = vmatprep.mubr.msk.bf16.mxu1 %vm2484_vm1, %v2483_v15 }
 0xf79   :  { %v1174_v16 = vpop.f32.mrb[24].mxu1 }
 0xf7a   :  { %v2221_v17 = vpop.f32.mrb[25].mxu1 }
 0xf7b   :  { %v1177_v18 = vpop.f32.mrb[26].mxu1 }
 0xf7c   :  { %v2222_v19 = vpop.f32.mrb[27].mxu1 }
 0xf89   :  { %v1299_v20 = vpop.f32.mrb[28].mxu1 }
 0xf8a   :  { %v2233_v21 = vpop.f32.mrb[29].mxu1 }
 0xf8b   :  { %v1302_v22 = vpop.f32.mrb[30].mxu1 }
 0xf8c   :  { %v2327_v26 = vpack.i.bf16 %v1302_v22, %v1299_v20  ;;  %v2234_v27 = vpop.f32.mrb[31].mxu1  ;;  %v2357_v20 = vld [vmem:[%s3000_s6 + $0x18] sm:$0xff]  }
 0xf8e   :  { %2328 = vrot.lane.b32.xlu1 %v2327_v26, %s2496_s14 }
 0xf91   :  { %v1424_v28 = vpop.f32.mrb[32].mxu1 }
 0xf92   :  { %v2245_v31 = vpop.f32.mrb[33].mxu1 }
 0xf93   :  { %v1427_v34 = vpop.f32.mrb[34].mxu1 }
 0xf94   :  { %v2332_v38 = vpack.i.bf16 %v1427_v34, %v1424_v28  ;;  %v2246_v40 = vpop.f32.mrb[35].mxu1 }
 0xf96   :  { %2333 = vrot.lane.b32.xlu0 %v2332_v38, %s2497_s17 }
 0xf99   :  { %v1549_v47 = vpop.f32.mrb[36].mxu1 }
 0xf9a   :  { %v2257_v41 = vpop.f32.mrb[37].mxu1 }
 0xf9b   :  { %v1552_v42 = vpop.f32.mrb[38].mxu1  ;;  %v1689_v41 = vrot.slane %v2805_v49, %v779_v13  ;;  %v2360_v13 = vld [vmem:[%s3001_s7 + $0x30] sm:$0xff]  }
 0xf9c   :  { %v2337_v43 = vpack.i.bf16 %v1552_v42, %v1549_v47  ;;  %v2258_v44 = vpop.f32.mrb[39].mxu1 }
 0xf9e   :  { %2338 = vrot.lane.b32.xlu1 %v2337_v43, %s2498_s18 }
0x1000   :  { %v2329_v48 = vpop.permute.xlu1 %2328 }
0x1001   :  { %v2331_v50 = vunpack.i.h.bf16 %v2329_v48  ;;  %v2330_v51 = vunpack.i.l.bf16 %v2329_v48 }
0x1003   :  { %v1581_v55 = vsel %vm149_vm2, %v1177_v18, %v2331_v50  ;;  %v1580_v25 = vsel %vm149_vm2, %v1174_v16, %v2330_v51  ;;  %v2359_v50 = vld [vmem:[%s3001_s7 + $0x28] sm:$0xff]   ;;  %v2361_v51 = vld [vmem:[%s3001_s7 + $0x38] sm:$0xff]  }
0x1008   :  { %v2334_v39 = vpop.permute.xlu0 %2333 }
0x1009   :  { %v2336_v52 = vunpack.i.h.bf16 %v2334_v39  ;;  %v2335_v53 = vunpack.i.l.bf16 %v2334_v39  ;;  %v2358_v39 = vld [vmem:[%s3001_s7 + $0x20] sm:$0xff]  }
0x100b   :  { %v1583_v58 = vsel %vm201_vm3, %v1581_v55, %v2336_v52  ;;  %v1582_v59 = vsel %vm201_vm3, %v1580_v25, %v2335_v53  ;;  %v1701_v52 = vrot.slane %v2805_v49, %v790_v29 }
0x1010   :  { %v2339_v54 = vpop.permute.xlu1 %2338 }
0x1011   :  { %v2341_v57 = vunpack.i.h.bf16 %v2339_v54  ;;  %v2340_v56 = vunpack.i.l.bf16 %v2339_v54 }
0x1013   :  { %v1585_v62 = vsel %vm675_vm4, %v1583_v58, %v2341_v57  ;;  %v1584_v63 = vsel %vm675_vm4, %v1582_v59, %v2340_v56 }
0x1014   :  { %v1591_v1 = vpack.c.bf16 %v1585_v62, %v1584_v63 }
0x1016   :  { %2264 = vmatmul.mubr.msk.bf16.vlgmr.msra.gmra.mrb[44].mxu0 %vm37_vm0, %v1591_v1 }
0x1017   :  { %2283 = vmatprep.mubr.msk.bf16.mxu0 %vm2484_vm1, %v2483_v15  ;;  %2276 = vmatpush3.bf16.msra.mxu0 %v2358_v39 }
0x1018   :  { %2277 = vmatprep.subr.bf16.mxu0 %v2483_v15 }
0x101b   :  { %2278 = vmatpush3.bf16.msra.mxu0 %v2359_v50  ;;  %v1889_v50 = vrot.slane %v2805_v49, %v978_v33 }
0x101c   :  { %2279 = vmatprep.subr.bf16.mxu0 %v2483_v15 }
0x101f   :  { %2280 = vmatpush3.bf16.msra.mxu0 %v2360_v13 }
0x1020   :  { %2281 = vmatprep.subr.bf16.mxu0 %v2483_v15 }
0x1023   :  { %2282 = vmatpush3.bf16.msra.mxu0 %v2361_v51  ;;  %v1895_v51 = vrot.slane %v2805_v49, %v984_v35  ;;  %v1907_v35 = vrot.slane %v2458_v24, %v2735_v9 }
0x10e9   :  { %v1645_v60 = vpop.f32.mrb[44].mxu0 }
0x10ea   :  { %v1646_v37 = vadd.f32 %v1645_v60, %v1595_v36  ;;  %v2265_v2 = vpop.f32.mrb[45].mxu0 }
0x10eb   :  { %v1648_v3 = vpop.f32.mrb[46].mxu0 }
0x10ec   :  { %v1649_v0 = vadd.f32 %v1648_v3, %v1595_v36  ;;  %v2266_v4 = vpop.f32.mrb[47].mxu0  ;;  %v1652_v5 = vadd.f32 %v1646_v37, %v2793_v45 }
0x10ee   :  { %v1654_v6 = vsel %vm37_vm0, %v1652_v5, 0.0  ;;  %v1653_v7 = vadd.f32 %v1649_v0, %v2795_v46  ;;  %v2356_v46 = vld [vmem:[%s3000_s6 + $0x10] sm:$0xff]  }
0x10ef   :  { %1655 = vadd.xlane.f32.xlu0 %v1654_v6  ;;  %2268 = vmatpush3.bf16.msra.mxu1 %v2356_v46 }
0x10f0   :  { %v1657_v8 = vsel %vm37_vm0, %v1653_v7, 0.0  ;;  %2269 = vmatprep.subr.bf16.mxu1 %v2483_v15 }
0x10f1   :  { %1658 = vadd.xlane.f32.xlu1 %v1657_v8 }
0x10f3   :  { %2270 = vmatpush3.bf16.msra.mxu1 %v2357_v20 }
0x10f4   :  { %2287 = vmatprep.subr.bf16.mxu1 %v2483_v15 }
0x117c   :  { %v1656_v10 = vpop.xlane.xlu0 %1655 }
0x117d   :  { %v1660_v11 = vmul.f32 0.03125, %v1656_v10 }
0x117e   :  { %v1659_v12 = vpop.xlane.xlu1 %1658 }
0x117f   :  { %v1662_v30 = vsub.f32 %v1652_v5, %v1660_v11  ;;  %v1661_v14 = vmul.f32 0.03125, %v1659_v12  ;;  %v1789_v12 = vrot.slane %v2805_v49, %v877_v61 }
0x1181   :  { %v1663_v16 = vsub.f32 %v1653_v7, %v1661_v14  ;;  %v1664_v17 = vmul.f32 %v1662_v30, %v1662_v30 }
0x1183   :  { %v1666_v18 = vsel %vm37_vm0, %v1664_v17, 0.0  ;;  %v1665_v19 = vmul.f32 %v1663_v16, %v1663_v16 }
0x1184   :  { %1667 = vadd.xlane.f32.xlu0 %v1666_v18 }
0x1185   :  { %v1669_v45 = vsel %vm37_vm0, %v1665_v19, 0.0 }
0x1188   :  { %1670 = vadd.xlane.f32.xlu0 %v1669_v45 }
0x1211   :  { %v1668_v21 = vpop.xlane.xlu0 %1667 }
0x1212   :  { %v1672_v22 = vmul.f32 0.03125, %v1668_v21 }
0x1214   :  { %v1674_v23 = vadd.f32 1e-12, %v1672_v22 }
0x1215   :  { %v1671_v26 = vpop.xlane.xlu0 %1670 }
0x1216   :  { %2444 = vrsqrt.f32 %v1674_v23  ;;  %v1673_v27 = vmul.f32 0.03125, %v1671_v26 }
0x1218   :  { %v1675_v28 = vadd.f32 1e-12, %v1673_v27 }
0x121a   :  { %2446 = vrsqrt.f32 %v1675_v28 }
0x1220   :  { %v2445_v31 = vpop.eup %2444 }
0x1221   :  { %v1678_v34 = vmul.f32 %v2445_v31, %v1662_v30 }
0x1223   :  { %v1684_v40 = vmul.f32 %v1683_v32, %v1678_v34 }
0x1224   :  { %v2447_v38 = vpop.eup %2446 }
0x1225   :  { %v1679_v47 = vmul.f32 %v2447_v38, %v1663_v16  ;;  %v1690_v43 = vadd.f32 %v1689_v41, %v1684_v40  ;;  %v2362_v40 = vld [vmem:[%s3002_s8] sm:$0xff]  }
0x1227   :  { %v1685_v42 = vmul.f32 %v1683_v32, %v1679_v47  ;;  %v2363_v47 = vld [vmem:[%s3002_s8 + $0x8] sm:$0xff]  }
0x1229   :  { %v1691_v44 = vadd.f32 %v1689_v41, %v1685_v42 }
0x122b   :  { %v1697_v48 = vpack.c.bf16 %v1691_v44, %v1690_v43 }
0x122d   :  { %2272 = vmatmul.mubr.msk.bf16.vlgmr.msra.gmra.mrb[40].mxu1 %vm37_vm0, %v1697_v48 }
0x122e   :  { %2291 = vmatprep.mubr.msk.bf16.mxu1 %vm2484_vm1, %v2483_v15  ;;  %2288 = vmatpush3.bf16.msra.mxu1 %v2362_v40 }
0x122f   :  { %2289 = vmatprep.subr.bf16.mxu1 %v2483_v15 }
0x1232   :  { %2290 = vmatpush3.bf16.msra.mxu1 %v2363_v47 }
0x1300   :  { %v1751_v53 = vpop.f32.mrb[40].mxu1 }
0x1301   :  { %v1752_v54 = vadd.f32 %v1751_v53, %v1701_v52  ;;  %v2273_v55 = vpop.f32.mrb[41].mxu1 }
0x1302   :  { %v1754_v25 = vpop.f32.mrb[42].mxu1 }
0x1303   :  { %v1760_v57 = vmul.f32 0.044715, %v1752_v54  ;;  %v1755_v56 = vadd.f32 %v1754_v25, %v1701_v52  ;;  %v2274_v58 = vpop.f32.mrb[43].mxu1  ;;  %v1758_v5 = vmul.f32 0.5, %v1752_v54 }
0x1305   :  { %v1762_v59 = vmul.f32 %v1760_v57, %v1752_v54  ;;  %v1761_v62 = vmul.f32 0.044715, %v1755_v56  ;;  %v1759_v6 = vmul.f32 0.5, %v1755_v56 }
0x1307   :  { %v1764_v63 = vmul.f32 %v1762_v59, %v1752_v54  ;;  %v1763_v1 = vmul.f32 %v1761_v62, %v1755_v56 }
0x1309   :  { %v1766_v36 = vadd.f32 %v1764_v63, %v1752_v54  ;;  %v1765_v60 = vmul.f32 %v1763_v1, %v1755_v56 }
0x130b   :  { %v1768_v37 = vmul.f32 0.7978846, %v1766_v36  ;;  %v1767_v2 = vadd.f32 %v1765_v60, %v1755_v56 }
0x130d   :  { %2448 = vtanh.f32 %v1768_v37  ;;  %v1769_v3 = vmul.f32 0.7978846, %v1767_v2 }
0x130f   :  { %2450 = vtanh.f32 %v1769_v3 }
0x1317   :  { %v2449_v0 = vpop.eup %2448 }
0x1318   :  { %v1772_v29 = vadd.f32 1.0, %v2449_v0 }
0x1319   :  { %v2451_v4 = vpop.eup %2450 }
0x131a   :  { %v1773_v7 = vadd.f32 1.0, %v2451_v4  ;;  %v1774_v8 = vmul.f32 %v1772_v29, %v1758_v5 }
0x131c   :  { %v1775_v10 = vmul.f32 %v1773_v7, %v1759_v6 }
0x131e   :  { %v1785_v11 = vpack.c.bf16 %v1775_v10, %v1774_v8 }
0x1320   :  { %2284 = vmatmul.mubr.msk.bf16.vlgmr.msra.gmra.mrb[48].mxu0 %vm903_vm5, %v1785_v11 }
0x13f3   :  { %v1851_v30 = vpop.f32.mrb[48].mxu0 }
0x13f4   :  { %v1852_v14 = vadd.f32 %v1851_v30, %v1789_v12  ;;  %v2285_v16 = vpop.f32.mrb[49].mxu0 }
0x13f5   :  { %v1854_v17 = vpop.f32.mrb[50].mxu0 }
0x13f6   :  { %v1855_v18 = vadd.f32 %v1854_v17, %v1789_v12  ;;  %v2286_v19 = vpop.f32.mrb[51].mxu0  ;;  %v1858_v45 = vadd.f32 %v1852_v14, %v1690_v43 }
0x13f8   :  { %v1860_v46 = vsel %vm37_vm0, %v1858_v45, 0.0  ;;  %v1859_v20 = vadd.f32 %v1855_v18, %v1691_v44 }
0x13f9   :  { %1861 = vadd.xlane.f32.xlu1 %v1860_v46 }
0x13fa   :  { %v1863_v21 = vsel %vm37_vm0, %v1859_v20, 0.0 }
0x13fb   :  { %1864 = vadd.xlane.f32.xlu0 %v1863_v21 }
0x1486   :  { %v1862_v22 = vpop.xlane.xlu1 %1861 }
0x1487   :  { %v1866_v23 = vmul.f32 0.03125, %v1862_v22 }
0x1488   :  { %v1865_v26 = vpop.xlane.xlu0 %1864 }
0x1489   :  { %v1868_v27 = vsub.f32 %v1858_v45, %v1866_v23  ;;  %v1867_v28 = vmul.f32 0.03125, %v1865_v26 }
0x148b   :  { %v1869_v61 = vsub.f32 %v1859_v20, %v1867_v28  ;;  %v1870_v31 = vmul.f32 %v1868_v27, %v1868_v27 }
0x148d   :  { %v1872_v32 = vsel %vm37_vm0, %v1870_v31, 0.0  ;;  %v1871_v34 = vmul.f32 %v1869_v61, %v1869_v61 }
0x148e   :  { %1873 = vadd.xlane.f32.xlu1 %v1872_v32 }
0x148f   :  { %v1875_v38 = vsel %vm37_vm0, %v1871_v34, 0.0 }
0x1490   :  { %1876 = vadd.xlane.f32.xlu0 %v1875_v38 }
0x151b   :  { %v1874_v41 = vpop.xlane.xlu1 %1873 }
0x151c   :  { %v1878_v42 = vmul.f32 0.03125, %v1874_v41 }
0x151d   :  { %v1877_v43 = vpop.xlane.xlu0 %1876 }
0x151e   :  { %v1880_v44 = vadd.f32 1e-12, %v1878_v42  ;;  %v1879_v48 = vmul.f32 0.03125, %v1877_v43 }
0x1520   :  { %2452 = vrsqrt.f32 %v1880_v44  ;;  %v1881_v39 = vadd.f32 1e-12, %v1879_v48 }
0x1522   :  { %2454 = vrsqrt.f32 %v1881_v39 }
0x152a   :  { %v2453_v13 = vpop.eup %2452 }
0x152b   :  { %v1884_v52 = vmul.f32 %v2453_v13, %v1868_v27 }
0x152c   :  { %v2455_v15 = vpop.eup %2454 }
0x152d   :  { %v1890_v53 = vmul.f32 %v1889_v50, %v1884_v52  ;;  %v1885_v54 = vmul.f32 %v2455_v15, %v1869_v61 }
0x152f   :  { %v1896_v55 = vadd.f32 %v1895_v51, %v1890_v53  ;;  %v1891_v25 = vmul.f32 %v1889_v50, %v1885_v54 }
0x1531   :  { %v1897_v57 = vadd.f32 %v1895_v51, %v1891_v25  ;;  %v1902_v56 = vpack.c.bf16 %v1896_v55, %v1896_v55 }
0x1533   :  { %v1903_v58 = vpack.c.bf16 %v1897_v57, %v1897_v57  ;;  %v1910_v62 = vunpack.c.l.b16 %v1902_v56 }
0x1535   :  { %v1911_v59 = vunpack.c.l.b16 %v1903_v58 }
0x1537   :  { %v1912_v63 = vrot.slane %v1911_v59, 7 }
0x1539   :  { %v1914_v1 = vsel %vm1913_vm6, %v1912_v63, %v1910_v62 }
0x153a   :  { %v1915_v33 = vpack.c.b16 %v1914_v1, %v1914_v1 }
0x153c   :  { %2292 = vmatmul.mubr.msk.bf16.vlgmr.msra.gmra.mrb[44].mxu1 %vm37_vm0, %v1915_v33 }
0x160f   :  { %v1965_v49 = vpop.f32.mrb[44].mxu1 }
0x1610   :  { %v1966_v36 = vadd.f32 %v1965_v49, %v1907_v35  ;;  %v2293_v60 = vpop.f32.mrb[45].mxu1 }
0x1611   :  { %v1968_v37 = vpop.f32.mrb[46].mxu1 }
0x1612   :  { %2456 = vtanh.f32 %v1966_v36  ;;  %v2294_v2 = vpop.f32.mrb[47].mxu1 }
0x161c   :  { %v2457_v3 = vpop.eup %2456 }
0x161d   :  { %1973 = vst.msk [vmem:[#allocation2] sm:$0x3] %vm1972_vm7, %v2457_v3 }
0x161e   :  { %2470 = shalt.err (!%p2467_p4)
}
0x161f   :  { %s2471_s13 = scalar_lea.hbm %s3003_s9, 32 }
0x1620   :  { %p2472_p5 = scmp.ne.s32.totalorder %s3003_s9, %s2471_s13  ;;  %p2475_p6 = scmp.lt.u32.totalorder %s2471_s13, %s3003_s9 }
0x1622   :  { %p2477_p7 = pnand %p2475_p6, %p2472_p5 }
0x1624   :  { %2480 = shalt.err (!%p2477_p7)
}
0x1625   :  { %1983 = dma.vmem_to_hbm [thread:$0]  %s1981_s29, 32, %s3003_s9, [#allocation3]  }
0x1626   :  { %2481 = dma.done.wait [#allocation3], 32  }
0x1627   :  { %2482 = vsyncadd [#allocation3], 4294967264 }
0x1628   :  { %1987 = vsyncpa [#allocation3], 1 }

</bundles_post_ra>
